<compile_context>
chip_gen: v6e
topology: v6e:2x2x1
jax: 0.10.0
libtpu: 0.0.40
codegen_flags: <defaults>
</compile_context>

<pallas_src>
import functools

import numpy as np

import jax
import jax.numpy as jnp
from jax import lax
from jax.experimental import pallas as pl
from jax.experimental.pallas import tpu as pltpu


def _round_up(x, m):
    return (x + m - 1) // m * m


def _online_contrastive_kernel(bi_ref, bj_ref, sel_ref,
                               e_ref, eT_ref, nrm_i_ref, nrm_j_ref,
                               lab_i_ref, lab_j_ref,
                               out_ref, gram_ref, *,
                               margin, ti, tj, ch, steps_per_core):
    # TODO(synk): margin is baked as a compile-time constant (recompile per
    #             margin value); it is fixed for a training run in practice.
    c = pl.program_id(0)                 # core axis ("parallel")
    t = pl.program_id(1)                 # block axis ("arbitrary")
    step = c * steps_per_core + t
    sel = sel_ref[step]                  # 0 = dummy, 1 = above-diag, 2 = diag

    @pl.when(t == 0)
    def _init():
        out_ref[...] = jnp.zeros_like(out_ref)

    @pl.when(sel > 0)
    def _matmul():
        # (TI, TJ) gram block on the MXU; operands may be bf16, acc is f32.
        gram_ref[...] = jnp.dot(e_ref[...], eT_ref[...],
                                preferred_element_type=jnp.float32)

    n_chunks = ti // ch

    def _accumulate(masked):
        nrm_j = nrm_j_ref[...]           # (1, TJ) f32   (loop-invariant)
        lab_j = lab_j_ref[...]           # (1, TJ) int32 (loop-invariant)
        if masked:
            col_idx = (bj_ref[step] * tj
                       + lax.broadcasted_iota(jnp.int32, (1, tj), 1))
            row_base = bi_ref[step] * ti

        def body(ci, acc):
            r0 = pl.multiple_of(ci * ch, ch)
            g = gram_ref[pl.ds(r0, ch), :]          # (CH, TJ) f32
            ni = nrm_i_ref[pl.ds(r0, ch), :]        # (CH, 1)  f32
            li = lab_i_ref[pl.ds(r0, ch), :]        # (CH, 1)  int32
            # ||e_i - e_j||^2 = ||e_i||^2 + ||e_j||^2 - 2 <e_i, e_j>
            d2 = jnp.maximum(ni + nrm_j - 2.0 * g, 0.0)
            hinge = jnp.maximum(margin - jnp.sqrt(d2), 0.0)   # sqrt -> EUP
            loss = jnp.where(li == lab_j, d2, hinge * hinge)
            if masked:
                ridx = (row_base + r0
                        + lax.broadcasted_iota(jnp.int32, (ch, 1), 0))
                loss = jnp.where(ridx < col_idx, loss, 0.0)
            if ch > 8:
                # Pure VPU vreg-group reduce (no cross-lane work).
                loss = loss.reshape(ch // 8, 8, tj).sum(axis=0)
            return acc + loss

        acc = lax.fori_loop(0, n_chunks, body,
                            jnp.zeros((8, tj), jnp.float32), unroll=True)
        out_ref[...] += acc[None, :, :]

    @pl.when(sel == 1)       # strictly above the diagonal: no masking at all
    def _fast():
        _accumulate(masked=False)

    @pl.when(sel == 2)       # overlaps the diagonal: row<col mask per chunk
    def _diag():
        _accumulate(masked=True)


def online_contrastive_loss(embeddings, target, margin=1.0, *,
                            tile_i=256, tile_j=512, chunk=16,
                            use_bf16=True, num_cores=2):
    n, d = embeddings.shape
    if n < 2:
        return jnp.float32(0.0)

    # ---- Tile selection: lane/MXU aligned, clamped for small batches, and one
    # tile size divides the other so n_pad = multiple of max(ti, tj).
    lim = _round_up(n, 128)
    ti = min(_round_up(max(int(tile_i), 128), 128), lim)
    tj = min(_round_up(max(int(tile_j), 128), 128), lim)
    if tj >= ti:
        tj = max(ti, (tj // ti) * ti)
    else:
        ti = max(tj, (ti // tj) * tj)
    n_pad = _round_up(n, max(ti, tj))
    gi = n_pad // ti
    gj = n_pad // tj

    # Epilogue chunk height: multiple of 8 sublanes, divides ti.
    ch = max(8, min(_round_up(int(chunk), 8), ti))
    while ti % ch:
        ch -= 8

    # ---- Upper-triangular block enumeration (i-major), split over cores.
    blocks = []
    for i in range(gi):
        for j in range(gj):
            row_lo, row_hi = i * ti, i * ti + ti - 1
            col_lo, col_hi = j * tj, j * tj + tj - 1
            if row_lo >= col_hi:          # block has no element with row < col
                continue
            sel_code = 2 if row_hi >= col_lo else 1   # 2 = needs row<col mask
            blocks.append((i, j, sel_code))
    n_blocks = len(blocks)
    ncores = max(1, int(num_cores))
    spc = -(-n_blocks // ncores)          # steps per core (ceil)
    # Dummy steps (sel=0) pad the last core; they DMA block (0,0) but add 0.
    blocks += [(0, 0, 0)] * (ncores * spc - n_blocks)
    bi_arr = jnp.asarray(np.array([b[0] for b in blocks], np.int32))
    bj_arr = jnp.asarray(np.array([b[1] for b in blocks], np.int32))
    sel_arr = jnp.asarray(np.array([b[2] for b in blocks], np.int32))

    # ---- Operand preparation.
    num_pad = n_pad - n
    mm_dtype = jnp.bfloat16 if use_bf16 else jnp.float32
    e_pad = jnp.pad(embeddings.astype(jnp.float32), ((0, num_pad), (0, 0)))
    e_mm = e_pad.astype(mm_dtype)                 # (n_pad, d)  LHS row tiles
    eT_mm = e_mm.T                                # (d, n_pad)  lane-dense RHS
    # Norms from the (possibly bf16-quantized) matmul operands so the
    # ||x||^2 + ||y||^2 - 2<x,y> cancellation is consistent in the bf16 path.
    e_q = e_mm.astype(jnp.float32)
    norms = jnp.sum(e_q * e_q, axis=1)
    idx = jnp.arange(n_pad, dtype=jnp.int32)
    pad_row = idx >= n
    # Padded rows: huge norm => dist >> margin => hinge term is exactly 0.
    norms = jnp.where(pad_row, jnp.float32(1e12), norms)
    labels = target.astype(jnp.int32)
    # Padded rows: unique sentinel labels strictly below every real label so
    # every padded pair is "negative" (and thus contributes exactly 0).
    sentinels = jnp.min(labels) - 1 - idx
    lab_full = jnp.where(pad_row, sentinels, jnp.pad(labels, (0, num_pad)))

    nrm_col = norms.reshape(n_pad, 1)
    nrm_row = norms.reshape(1, n_pad)
    lab_col = lab_full.reshape(n_pad, 1)
    lab_row = lab_full.reshape(1, n_pad)

    kernel = functools.partial(_online_contrastive_kernel,
                               margin=float(margin), ti=ti, tj=tj, ch=ch,
                               steps_per_core=spc)

    # Explicit VMEM budget (double-buffered operands + gram scratch + output).
    itemsize = 2 if use_bf16 else 4
    vmem_need = (2 * (ti * d + d * tj) * itemsize
                 + ti * tj * 4
                 + (2 * 8 * tj + 4 * (ti + tj)) * 4)
    vmem_limit = max(32 << 20, min(int(1.5 * vmem_need) + (4 << 20), 100 << 20))

    partials = pl.pallas_call(
        kernel,
        out_shape=jax.ShapeDtypeStruct((ncores, 8, tj), jnp.float32),
        grid_spec=pltpu.PrefetchScalarGridSpec(
            num_scalar_prefetch=3,
            grid=(ncores, spc),
            in_specs=[
                # LHS rows: block index changes only when bi changes (i-major
                # ordering), so revisited blocks are not re-DMA'd.
                pl.BlockSpec((ti, d),
                             lambda c, t, bi, bj, sl: (bi[c * spc + t], 0)),
                # Lane-dense pre-transposed RHS columns.
                pl.BlockSpec((d, tj),
                             lambda c, t, bi, bj, sl: (0, bj[c * spc + t])),
                pl.BlockSpec((ti, 1),
                             lambda c, t, bi, bj, sl: (bi[c * spc + t], 0)),
                pl.BlockSpec((1, tj),
                             lambda c, t, bi, bj, sl: (0, bj[c * spc + t])),
                pl.BlockSpec((ti, 1),
                             lambda c, t, bi, bj, sl: (bi[c * spc + t], 0)),
                pl.BlockSpec((1, tj),
                             lambda c, t, bi, bj, sl: (0, bj[c * spc + t])),
            ],
            # One resident lane-dense accumulator block per core.
            out_specs=pl.BlockSpec((1, 8, tj),
                                   lambda c, t, bi, bj, sl: (c, 0, 0)),
            scratch_shapes=[pltpu.VMEM((ti, tj), jnp.float32)],
        ),
        compiler_params=pltpu.CompilerParams(
            dimension_semantics=("parallel", "arbitrary"),
            vmem_limit_bytes=vmem_limit),
    )(bi_arr, bj_arr, sel_arr, e_mm, eT_mm, nrm_col, nrm_row, lab_col, lab_row)

    # Exact static pair count N*(N-1)/2 (no in-kernel mask counting).
    count = n * (n - 1) // 2
    return jnp.sum(partials) * (1.0 / count)


def _reference_loss(embeddings, target, margin=1.0):
    """float64 NumPy reference mirroring the PyTorch pair-gather formulation."""
    emb = np.asarray(embeddings, dtype=np.float64)
    lab = np.asarray(target)
    n = emb.shape[0]
    iu, ju = np.triu_indices(n, k=1)
    d2 = ((emb[iu] - emb[ju]) ** 2).sum(axis=1)
    pos = lab[iu] == lab[ju]
    pos_loss = d2[pos]
    neg_loss = np.maximum(margin - np.sqrt(d2[~pos]), 0.0) ** 2
    return float(np.concatenate([pos_loss, neg_loss]).mean())


if __name__ == "__main__":
    key = jax.random.PRNGKey(0)
    k1, k2, k3, k4 = jax.random.split(key, 4)
    margin = 1.0

    # Case 1: tiny batch -> single diagonal (128,128) block (masked path +
    # a dummy step on the second core).
    N1, D1 = 8, 32
    emb1 = 0.1 * jax.random.normal(k1, (N1, D1), dtype=jnp.float32)
    lab1 = jax.random.randint(k2, (N1,), 0, 3, dtype=jnp.int32)
    ref1 = _reference_loss(emb1, lab1, margin)

    out1_f32 = jax.block_until_ready(
        online_contrastive_loss(emb1, lab1, margin, use_bf16=False))
    out1_bf16 = jax.block_until_ready(
        online_contrastive_loss(emb1, lab1, margin, use_bf16=True))
    assert jnp.allclose(out1_f32, ref1, rtol=2e-3, atol=1e-5), (out1_f32, ref1)
    assert jnp.allclose(out1_bf16, ref1, rtol=2e-2, atol=1e-3), (out1_bf16, ref1)

    # Case 2: multi-block grids with padding — exercises the compact
    # upper-triangular block list, masked + unmasked epilogue paths, the
    # balanced two-core split (with a dummy step), and TI != TJ tiling.
    N2, D2 = 300, 64
    emb2 = 0.08 * jax.random.normal(k3, (N2, D2), dtype=jnp.float32)
    lab2 = jax.random.randint(k4, (N2,), 0, 4, dtype=jnp.int32)
    ref2 = _reference_loss(emb2, lab2, margin)

    for kwargs in ({"tile_i": 128, "tile_j": 128, "chunk": 8},
                   {"tile_i": 128, "tile_j": 256, "chunk": 16}):
        out2_f32 = jax.block_until_ready(
            online_contrastive_loss(emb2, lab2, margin, use_bf16=False, **kwargs))
        out2_bf16 = jax.block_until_ready(
            online_contrastive_loss(emb2, lab2, margin, use_bf16=True, **kwargs))
        assert jnp.allclose(out2_f32, ref2, rtol=2e-3, atol=1e-5), (kwargs, out2_f32, ref2)
        assert jnp.allclose(out2_bf16, ref2, rtol=2e-2, atol=1e-3), (kwargs, out2_bf16, ref2)

    print("KERNEL_OK")
</pallas_src>

<mosaic_0001>
module attributes {stable_mosaic.version = 11 : i64} {
  func.func @_online_contrastive_kernel(%arg0: i32, %arg1: i32, %arg2: memref<2xi32, #tpu.memory_space<smem>>, %arg3: memref<2xi32, #tpu.memory_space<smem>>, %arg4: memref<2xi32, #tpu.memory_space<smem>>, %arg5: memref<128x32xf32, #tpu.memory_space<vmem>>, %arg6: memref<32x128xf32, #tpu.memory_space<vmem>>, %arg7: memref<128x1xf32, #tpu.memory_space<vmem>>, %arg8: memref<1x128xf32, #tpu.memory_space<vmem>>, %arg9: memref<128x1xi32, #tpu.memory_space<vmem>>, %arg10: memref<1x128xi32, #tpu.memory_space<vmem>>, %arg11: memref<1x8x128xf32, #tpu.memory_space<vmem>>, %arg12: memref<128x128xf32, #tpu.memory_space<vmem>>) attributes {dimension_semantics = [#tpu.dimension_semantics<parallel>, #tpu.dimension_semantics<arbitrary>], iteration_bounds = array<i64: 2, 1>, scalar_prefetch = 3 : i64, scratch_operands = 1 : i64, tpu.core_type = #tpu.core_type<tc>, window_params = [{transform_indices = @transform_0, window_bounds = array<i64: 128, 32>}, {transform_indices = @transform_1, window_bounds = array<i64: 32, 128>}, {transform_indices = @transform_2, window_bounds = array<i64: 128, 1>}, {transform_indices = @transform_3, window_bounds = array<i64: 1, 128>}, {transform_indices = @transform_4, window_bounds = array<i64: 128, 1>}, {transform_indices = @transform_5, window_bounds = array<i64: 1, 128>}, {transform_indices = @transform_6, window_bounds = array<i64: 1, 8, 128>}]} {
    %c1_i32 = arith.constant 1 : i32
    %0 = arith.muli %arg0, %c1_i32 : i32
    %1 = arith.addi %0, %arg1 : i32
    %2 = arith.index_cast %1 : i32 to index
    %3 = memref.load %arg4[%2] : memref<2xi32, #tpu.memory_space<smem>>
    %c0_i32 = arith.constant 0 : i32
    %4 = arith.cmpi eq, %arg1, %c0_i32 : i32
    %5 = arith.extui %4 : i1 to i32
    %c0_i32_0 = arith.constant 0 : i32
    %6 = arith.cmpi ne, %5, %c0_i32_0 : i32
    scf.if %6 {
      %cst = arith.constant 0.000000e+00 : f32
      %16 = vector.broadcast %cst : f32 to vector<1x8x128xf32>
      %c0 = arith.constant 0 : index
      %c0_6 = arith.constant 0 : index
      %c0_7 = arith.constant 0 : index
      %17 = vector.load %arg11[%c0, %c0_6, %c0_7] : memref<1x8x128xf32, #tpu.memory_space<vmem>>, vector<1x8x128xf32>
      tpu.vector_store %arg11[%c0, %c0_6, %c0_7], %16 {strides = array<i32>} : memref<1x8x128xf32, #tpu.memory_space<vmem>>, vector<1x8x128xf32>,
    } else {
    }
    %c0_i32_1 = arith.constant 0 : i32
    %7 = arith.cmpi sgt, %3, %c0_i32_1 : i32
    %8 = arith.extui %7 : i1 to i32
    %c0_i32_2 = arith.constant 0 : i32
    %9 = arith.cmpi ne, %8, %c0_i32_2 : i32
    scf.if %9 {
      %c0 = arith.constant 0 : index
      %c0_6 = arith.constant 0 : index
      %16 = vector.load %arg5[%c0, %c0_6] : memref<128x32xf32, #tpu.memory_space<vmem>>, vector<128x32xf32>
      %c0_7 = arith.constant 0 : index
      %c0_8 = arith.constant 0 : index
      %17 = vector.load %arg6[%c0_7, %c0_8] : memref<32x128xf32, #tpu.memory_space<vmem>>, vector<32x128xf32>
      %cst = arith.constant dense<0.000000e+00> : vector<128x128xf32>
      %18 = tpu.matmul %16, %17, %cst {dimension_numbers = #tpu.dot_dimension_numbers<[1], [0], [0], [1], [0, 0, 1, 1], [], []>} : vector<128x32xf32>, vector<32x128xf32>, vector<128x128xf32> -> vector<128x128xf32>
      %c0_9 = arith.constant 0 : index
      %c0_10 = arith.constant 0 : index
      %19 = vector.load %arg12[%c0_9, %c0_10] : memref<128x128xf32, #tpu.memory_space<vmem>>, vector<128x128xf32>
      tpu.vector_store %arg12[%c0_9, %c0_10], %18 {strides = array<i32>} : memref<128x128xf32, #tpu.memory_space<vmem>>, vector<128x128xf32>,
    } else {
    }
    %c1_i32_3 = arith.constant 1 : i32
    %10 = arith.cmpi eq, %3, %c1_i32_3 : i32
    %11 = arith.extui %10 : i1 to i32
    %c0_i32_4 = arith.constant 0 : i32
    %12 = arith.cmpi ne, %11, %c0_i32_4 : i32
    scf.if %12 {
      %c0 = arith.constant 0 : index
      %c0_6 = arith.constant 0 : index
      %16 = vector.load %arg8[%c0, %c0_6] : memref<1x128xf32, #tpu.memory_space<vmem>>, vector<1x128xf32>
      %c0_7 = arith.constant 0 : index
      %c0_8 = arith.constant 0 : index
      %17 = vector.load %arg10[%c0_7, %c0_8] : memref<1x128xi32, #tpu.memory_space<vmem>>, vector<1x128xi32>
      %cst = arith.constant 0.000000e+00 : f32
      %18 = vector.broadcast %cst : f32 to vector<8x128xf32>
      %c0_i32_9 = arith.constant 0 : i32
      %c16_i32 = arith.constant 16 : i32
      %19 = arith.muli %c0_i32_9, %c16_i32 : i32
      %20 = tpu.assume_multiple %19, 16 : i32
      %21 = arith.index_cast %20 : i32 to index
      %c0_10 = arith.constant 0 : index
      %22 = vector.load %arg12[%21, %c0_10] : memref<128x128xf32, #tpu.memory_space<vmem>>, vector<16x128xf32>
      %23 = arith.index_cast %20 : i32 to index
      %c0_11 = arith.constant 0 : index
      %24 = vector.load %arg7[%23, %c0_11] : memref<128x1xf32, #tpu.memory_space<vmem>>, vector<16x1xf32>
      %25 = arith.index_cast %20 : i32 to index
      %c0_12 = arith.constant 0 : index
      %26 = vector.load %arg9[%25, %c0_12] : memref<128x1xi32, #tpu.memory_space<vmem>>, vector<16x1xi32>
      %27 = vector.broadcast %24 : vector<16x1xf32> to vector<16x128xf32>
      %28 = vector.broadcast %16 : vector<1x128xf32> to vector<16x128xf32>
      %29 = arith.addf %27, %28 : vector<16x128xf32>
      %cst_13 = arith.constant 2.000000e+00 : f32
      %30 = vector.broadcast %cst_13 : f32 to vector<16x128xf32>
      %31 = arith.mulf %30, %22 : vector<16x128xf32>
      %32 = arith.subf %29, %31 : vector<16x128xf32>
      %cst_14 = arith.constant 0.000000e+00 : f32
      %33 = vector.broadcast %cst_14 : f32 to vector<16x128xf32>
      %34 = arith.maximumf %32, %33 : vector<16x128xf32>
      %35 = math.sqrt %34 : vector<16x128xf32>
      %cst_15 = arith.constant 1.000000e+00 : f32
      %36 = vector.broadcast %cst_15 : f32 to vector<16x128xf32>
      %37 = arith.subf %36, %35 : vector<16x128xf32>
      %cst_16 = arith.constant 0.000000e+00 : f32
      %38 = vector.broadcast %cst_16 : f32 to vector<16x128xf32>
      %39 = arith.maximumf %37, %38 : vector<16x128xf32>
      %40 = vector.broadcast %26 : vector<16x1xi32> to vector<16x128xi32>
      %41 = vector.broadcast %17 : vector<1x128xi32> to vector<16x128xi32>
      %42 = arith.cmpi eq, %40, %41 : vector<16x128xi32>
      %43 = arith.mulf %39, %39 : vector<16x128xf32>
      %44 = arith.select %42, %34, %43 : vector<16x128xi1>, vector<16x128xf32>
      %45 = vector.shape_cast %44 : vector<16x128xf32> to vector<2x8x128xf32>
      %cst_17 = arith.constant dense<0.000000e+00> : vector<8x128xf32>
      %46 = vector.multi_reduction <add>, %45, %cst_17 [0] : vector<2x8x128xf32> to vector<8x128xf32>
      %47 = arith.addf %18, %46 : vector<8x128xf32>
      %c1_i32_18 = arith.constant 1 : i32
      %c16_i32_19 = arith.constant 16 : i32
      %48 = arith.muli %c1_i32_18, %c16_i32_19 : i32
      %49 = tpu.assume_multiple %48, 16 : i32
      %50 = arith.index_cast %49 : i32 to index
      %c0_20 = arith.constant 0 : index
      %51 = vector.load %arg12[%50, %c0_20] : memref<128x128xf32, #tpu.memory_space<vmem>>, vector<16x128xf32>
      %52 = arith.index_cast %49 : i32 to index
      %c0_21 = arith.constant 0 : index
      %53 = vector.load %arg7[%52, %c0_21] : memref<128x1xf32, #tpu.memory_space<vmem>>, vector<16x1xf32>
      %54 = arith.index_cast %49 : i32 to index
      %c0_22 = arith.constant 0 : index
      %55 = vector.load %arg9[%54, %c0_22] : memref<128x1xi32, #tpu.memory_space<vmem>>, vector<16x1xi32>
      %56 = vector.broadcast %53 : vector<16x1xf32> to vector<16x128xf32>
      %57 = vector.broadcast %16 : vector<1x128xf32> to vector<16x128xf32>
      %58 = arith.addf %56, %57 : vector<16x128xf32>
      %cst_23 = arith.constant 2.000000e+00 : f32
      %59 = vector.broadcast %cst_23 : f32 to vector<16x128xf32>
      %60 = arith.mulf %59, %51 : vector<16x128xf32>
      %61 = arith.subf %58, %60 : vector<16x128xf32>
      %cst_24 = arith.constant 0.000000e+00 : f32
      %62 = vector.broadcast %cst_24 : f32 to vector<16x128xf32>
      %63 = arith.maximumf %61, %62 : vector<16x128xf32>
      %64 = math.sqrt %63 : vector<16x128xf32>
      %cst_25 = arith.constant 1.000000e+00 : f32
      %65 = vector.broadcast %cst_25 : f32 to vector<16x128xf32>
      %66 = arith.subf %65, %64 : vector<16x128xf32>
      %cst_26 = arith.constant 0.000000e+00 : f32
      %67 = vector.broadcast %cst_26 : f32 to vector<16x128xf32>
      %68 = arith.maximumf %66, %67 : vector<16x128xf32>
      %69 = vector.broadcast %55 : vector<16x1xi32> to vector<16x128xi32>
      %70 = vector.broadcast %17 : vector<1x128xi32> to vector<16x128xi32>
      %71 = arith.cmpi eq, %69, %70 : vector<16x128xi32>
      %72 = arith.mulf %68, %68 : vector<16x128xf32>
      %73 = arith.select %71, %63, %72 : vector<16x128xi1>, vector<16x128xf32>
      %74 = vector.shape_cast %73 : vector<16x128xf32> to vector<2x8x128xf32>
      %cst_27 = arith.constant dense<0.000000e+00> : vector<8x128xf32>
      %75 = vector.multi_reduction <add>, %74, %cst_27 [0] : vector<2x8x128xf32> to vector<8x128xf32>
      %76 = arith.addf %47, %75 : vector<8x128xf32>
      %c2_i32_28 = arith.constant 2 : i32
      %c16_i32_29 = arith.constant 16 : i32
      %77 = arith.muli %c2_i32_28, %c16_i32_29 : i32
      %78 = tpu.assume_multiple %77, 16 : i32
      %79 = arith.index_cast %78 : i32 to index
      %c0_30 = arith.constant 0 : index
      %80 = vector.load %arg12[%79, %c0_30] : memref<128x128xf32, #tpu.memory_space<vmem>>, vector<16x128xf32>
      %81 = arith.index_cast %78 : i32 to index
      %c0_31 = arith.constant 0 : index
      %82 = vector.load %arg7[%81, %c0_31] : memref<128x1xf32, #tpu.memory_space<vmem>>, vector<16x1xf32>
      %83 = arith.index_cast %78 : i32 to index
      %c0_32 = arith.constant 0 : index
      %84 = vector.load %arg9[%83, %c0_32] : memref<128x1xi32, #tpu.memory_space<vmem>>, vector<16x1xi32>
      %85 = vector.broadcast %82 : vector<16x1xf32> to vector<16x128xf32>
      %86 = vector.broadcast %16 : vector<1x128xf32> to vector<16x128xf32>
      %87 = arith.addf %85, %86 : vector<16x128xf32>
      %cst_33 = arith.constant 2.000000e+00 : f32
      %88 = vector.broadcast %cst_33 : f32 to vector<16x128xf32>
      %89 = arith.mulf %88, %80 : vector<16x128xf32>
      %90 = arith.subf %87, %89 : vector<16x128xf32>
      %cst_34 = arith.constant 0.000000e+00 : f32
      %91 = vector.broadcast %cst_34 : f32 to vector<16x128xf32>
      %92 = arith.maximumf %90, %91 : vector<16x128xf32>
      %93 = math.sqrt %92 : vector<16x128xf32>
      %cst_35 = arith.constant 1.000000e+00 : f32
      %94 = vector.broadcast %cst_35 : f32 to vector<16x128xf32>
      %95 = arith.subf %94, %93 : vector<16x128xf32>
      %cst_36 = arith.constant 0.000000e+00 : f32
      %96 = vector.broadcast %cst_36 : f32 to vector<16x128xf32>
      %97 = arith.maximumf %95, %96 : vector<16x128xf32>
      %98 = vector.broadcast %84 : vector<16x1xi32> to vector<16x128xi32>
      %99 = vector.broadcast %17 : vector<1x128xi32> to vector<16x128xi32>
      %100 = arith.cmpi eq, %98, %99 : vector<16x128xi32>
      %101 = arith.mulf %97, %97 : vector<16x128xf32>
      %102 = arith.select %100, %92, %101 : vector<16x128xi1>, vector<16x128xf32>
      %103 = vector.shape_cast %102 : vector<16x128xf32> to vector<2x8x128xf32>
      %cst_37 = arith.constant dense<0.000000e+00> : vector<8x128xf32>
      %104 = vector.multi_reduction <add>, %103, %cst_37 [0] : vector<2x8x128xf32> to vector<8x128xf32>
      %105 = arith.addf %76, %104 : vector<8x128xf32>
      %c3_i32 = arith.constant 3 : i32
      %c16_i32_38 = arith.constant 16 : i32
      %106 = arith.muli %c3_i32, %c16_i32_38 : i32
      %107 = tpu.assume_multiple %106, 16 : i32
      %108 = arith.index_cast %107 : i32 to index
      %c0_39 = arith.constant 0 : index
      %109 = vector.load %arg12[%108, %c0_39] : memref<128x128xf32, #tpu.memory_space<vmem>>, vector<16x128xf32>
      %110 = arith.index_cast %107 : i32 to index
      %c0_40 = arith.constant 0 : index
      %111 = vector.load %arg7[%110, %c0_40] : memref<128x1xf32, #tpu.memory_space<vmem>>, vector<16x1xf32>
      %112 = arith.index_cast %107 : i32 to index
      %c0_41 = arith.constant 0 : index
      %113 = vector.load %arg9[%112, %c0_41] : memref<128x1xi32, #tpu.memory_space<vmem>>, vector<16x1xi32>
      %114 = vector.broadcast %111 : vector<16x1xf32> to vector<16x128xf32>
      %115 = vector.broadcast %16 : vector<1x128xf32> to vector<16x128xf32>
      %116 = arith.addf %114, %115 : vector<16x128xf32>
      %cst_42 = arith.constant 2.000000e+00 : f32
      %117 = vector.broadcast %cst_42 : f32 to vector<16x128xf32>
      %118 = arith.mulf %117, %109 : vector<16x128xf32>
      %119 = arith.subf %116, %118 : vector<16x128xf32>
      %cst_43 = arith.constant 0.000000e+00 : f32
      %120 = vector.broadcast %cst_43 : f32 to vector<16x128xf32>
      %121 = arith.maximumf %119, %120 : vector<16x128xf32>
      %122 = math.sqrt %121 : vector<16x128xf32>
      %cst_44 = arith.constant 1.000000e+00 : f32
      %123 = vector.broadcast %cst_44 : f32 to vector<16x128xf32>
      %124 = arith.subf %123, %122 : vector<16x128xf32>
      %cst_45 = arith.constant 0.000000e+00 : f32
      %125 = vector.broadcast %cst_45 : f32 to vector<16x128xf32>
      %126 = arith.maximumf %124, %125 : vector<16x128xf32>
      %127 = vector.broadcast %113 : vector<16x1xi32> to vector<16x128xi32>
      %128 = vector.broadcast %17 : vector<1x128xi32> to vector<16x128xi32>
      %129 = arith.cmpi eq, %127, %128 : vector<16x128xi32>
      %130 = arith.mulf %126, %126 : vector<16x128xf32>
      %131 = arith.select %129, %121, %130 : vector<16x128xi1>, vector<16x128xf32>
      %132 = vector.shape_cast %131 : vector<16x128xf32> to vector<2x8x128xf32>
      %cst_46 = arith.constant dense<0.000000e+00> : vector<8x128xf32>
      %133 = vector.multi_reduction <add>, %132, %cst_46 [0] : vector<2x8x128xf32> to vector<8x128xf32>
      %134 = arith.addf %105, %133 : vector<8x128xf32>
      %c4_i32 = arith.constant 4 : i32
      %c16_i32_47 = arith.constant 16 : i32
      %135 = arith.muli %c4_i32, %c16_i32_47 : i32
      %136 = tpu.assume_multiple %135, 16 : i32
      %137 = arith.index_cast %136 : i32 to index
      %c0_48 = arith.constant 0 : index
      %138 = vector.load %arg12[%137, %c0_48] : memref<128x128xf32, #tpu.memory_space<vmem>>, vector<16x128xf32>
      %139 = arith.index_cast %136 : i32 to index
      %c0_49 = arith.constant 0 : index
      %140 = vector.load %arg7[%139, %c0_49] : memref<128x1xf32, #tpu.memory_space<vmem>>, vector<16x1xf32>
      %141 = arith.index_cast %136 : i32 to index
      %c0_50 = arith.constant 0 : index
      %142 = vector.load %arg9[%141, %c0_50] : memref<128x1xi32, #tpu.memory_space<vmem>>, vector<16x1xi32>
      %143 = vector.broadcast %140 : vector<16x1xf32> to vector<16x128xf32>
      %144 = vector.broadcast %16 : vector<1x128xf32> to vector<16x128xf32>
      %145 = arith.addf %143, %144 : vector<16x128xf32>
      %cst_51 = arith.constant 2.000000e+00 : f32
      %146 = vector.broadcast %cst_51 : f32 to vector<16x128xf32>
      %147 = arith.mulf %146, %138 : vector<16x128xf32>
      %148 = arith.subf %145, %147 : vector<16x128xf32>
      %cst_52 = arith.constant 0.000000e+00 : f32
      %149 = vector.broadcast %cst_52 : f32 to vector<16x128xf32>
      %150 = arith.maximumf %148, %149 : vector<16x128xf32>
      %151 = math.sqrt %150 : vector<16x128xf32>
      %cst_53 = arith.constant 1.000000e+00 : f32
      %152 = vector.broadcast %cst_53 : f32 to vector<16x128xf32>
      %153 = arith.subf %152, %151 : vector<16x128xf32>
      %cst_54 = arith.constant 0.000000e+00 : f32
      %154 = vector.broadcast %cst_54 : f32 to vector<16x128xf32>
      %155 = arith.maximumf %153, %154 : vector<16x128xf32>
      %156 = vector.broadcast %142 : vector<16x1xi32> to vector<16x128xi32>
      %157 = vector.broadcast %17 : vector<1x128xi32> to vector<16x128xi32>
      %158 = arith.cmpi eq, %156, %157 : vector<16x128xi32>
      %159 = arith.mulf %155, %155 : vector<16x128xf32>
      %160 = arith.select %158, %150, %159 : vector<16x128xi1>, vector<16x128xf32>
      %161 = vector.shape_cast %160 : vector<16x128xf32> to vector<2x8x128xf32>
      %cst_55 = arith.constant dense<0.000000e+00> : vector<8x128xf32>
      %162 = vector.multi_reduction <add>, %161, %cst_55 [0] : vector<2x8x128xf32> to vector<8x128xf32>
      %163 = arith.addf %134, %162 : vector<8x128xf32>
      %c5_i32 = arith.constant 5 : i32
      %c16_i32_56 = arith.constant 16 : i32
      %164 = arith.muli %c5_i32, %c16_i32_56 : i32
      %165 = tpu.assume_multiple %164, 16 : i32
      %166 = arith.index_cast %165 : i32 to index
      %c0_57 = arith.constant 0 : index
      %167 = vector.load %arg12[%166, %c0_57] : memref<128x128xf32, #tpu.memory_space<vmem>>, vector<16x128xf32>
      %168 = arith.index_cast %165 : i32 to index
      %c0_58 = arith.constant 0 : index
      %169 = vector.load %arg7[%168, %c0_58] : memref<128x1xf32, #tpu.memory_space<vmem>>, vector<16x1xf32>
      %170 = arith.index_cast %165 : i32 to index
      %c0_59 = arith.constant 0 : index
      %171 = vector.load %arg9[%170, %c0_59] : memref<128x1xi32, #tpu.memory_space<vmem>>, vector<16x1xi32>
      %172 = vector.broadcast %169 : vector<16x1xf32> to vector<16x128xf32>
      %173 = vector.broadcast %16 : vector<1x128xf32> to vector<16x128xf32>
      %174 = arith.addf %172, %173 : vector<16x128xf32>
      %cst_60 = arith.constant 2.000000e+00 : f32
      %175 = vector.broadcast %cst_60 : f32 to vector<16x128xf32>
      %176 = arith.mulf %175, %167 : vector<16x128xf32>
      %177 = arith.subf %174, %176 : vector<16x128xf32>
      %cst_61 = arith.constant 0.000000e+00 : f32
      %178 = vector.broadcast %cst_61 : f32 to vector<16x128xf32>
      %179 = arith.maximumf %177, %178 : vector<16x128xf32>
      %180 = math.sqrt %179 : vector<16x128xf32>
      %cst_62 = arith.constant 1.000000e+00 : f32
      %181 = vector.broadcast %cst_62 : f32 to vector<16x128xf32>
      %182 = arith.subf %181, %180 : vector<16x128xf32>
      %cst_63 = arith.constant 0.000000e+00 : f32
      %183 = vector.broadcast %cst_63 : f32 to vector<16x128xf32>
      %184 = arith.maximumf %182, %183 : vector<16x128xf32>
      %185 = vector.broadcast %171 : vector<16x1xi32> to vector<16x128xi32>
      %186 = vector.broadcast %17 : vector<1x128xi32> to vector<16x128xi32>
      %187 = arith.cmpi eq, %185, %186 : vector<16x128xi32>
      %188 = arith.mulf %184, %184 : vector<16x128xf32>
      %189 = arith.select %187, %179, %188 : vector<16x128xi1>, vector<16x128xf32>
      %190 = vector.shape_cast %189 : vector<16x128xf32> to vector<2x8x128xf32>
      %cst_64 = arith.constant dense<0.000000e+00> : vector<8x128xf32>
      %191 = vector.multi_reduction <add>, %190, %cst_64 [0] : vector<2x8x128xf32> to vector<8x128xf32>
      %192 = arith.addf %163, %191 : vector<8x128xf32>
      %c6_i32 = arith.constant 6 : i32
      %c16_i32_65 = arith.constant 16 : i32
      %193 = arith.muli %c6_i32, %c16_i32_65 : i32
      %194 = tpu.assume_multiple %193, 16 : i32
      %195 = arith.index_cast %194 : i32 to index
      %c0_66 = arith.constant 0 : index
      %196 = vector.load %arg12[%195, %c0_66] : memref<128x128xf32, #tpu.memory_space<vmem>>, vector<16x128xf32>
      %197 = arith.index_cast %194 : i32 to index
      %c0_67 = arith.constant 0 : index
      %198 = vector.load %arg7[%197, %c0_67] : memref<128x1xf32, #tpu.memory_space<vmem>>, vector<16x1xf32>
      %199 = arith.index_cast %194 : i32 to index
      %c0_68 = arith.constant 0 : index
      %200 = vector.load %arg9[%199, %c0_68] : memref<128x1xi32, #tpu.memory_space<vmem>>, vector<16x1xi32>
      %201 = vector.broadcast %198 : vector<16x1xf32> to vector<16x128xf32>
      %202 = vector.broadcast %16 : vector<1x128xf32> to vector<16x128xf32>
      %203 = arith.addf %201, %202 : vector<16x128xf32>
      %cst_69 = arith.constant 2.000000e+00 : f32
      %204 = vector.broadcast %cst_69 : f32 to vector<16x128xf32>
      %205 = arith.mulf %204, %196 : vector<16x128xf32>
      %206 = arith.subf %203, %205 : vector<16x128xf32>
      %cst_70 = arith.constant 0.000000e+00 : f32
      %207 = vector.broadcast %cst_70 : f32 to vector<16x128xf32>
      %208 = arith.maximumf %206, %207 : vector<16x128xf32>
      %209 = math.sqrt %208 : vector<16x128xf32>
      %cst_71 = arith.constant 1.000000e+00 : f32
      %210 = vector.broadcast %cst_71 : f32 to vector<16x128xf32>
      %211 = arith.subf %210, %209 : vector<16x128xf32>
      %cst_72 = arith.constant 0.000000e+00 : f32
      %212 = vector.broadcast %cst_72 : f32 to vector<16x128xf32>
      %213 = arith.maximumf %211, %212 : vector<16x128xf32>
      %214 = vector.broadcast %200 : vector<16x1xi32> to vector<16x128xi32>
      %215 = vector.broadcast %17 : vector<1x128xi32> to vector<16x128xi32>
      %216 = arith.cmpi eq, %214, %215 : vector<16x128xi32>
      %217 = arith.mulf %213, %213 : vector<16x128xf32>
      %218 = arith.select %216, %208, %217 : vector<16x128xi1>, vector<16x128xf32>
      %219 = vector.shape_cast %218 : vector<16x128xf32> to vector<2x8x128xf32>
      %cst_73 = arith.constant dense<0.000000e+00> : vector<8x128xf32>
      %220 = vector.multi_reduction <add>, %219, %cst_73 [0] : vector<2x8x128xf32> to vector<8x128xf32>
      %221 = arith.addf %192, %220 : vector<8x128xf32>
      %c7_i32 = arith.constant 7 : i32
      %c16_i32_74 = arith.constant 16 : i32
      %222 = arith.muli %c7_i32, %c16_i32_74 : i32
      %223 = tpu.assume_multiple %222, 16 : i32
      %224 = arith.index_cast %223 : i32 to index
      %c0_75 = arith.constant 0 : index
      %225 = vector.load %arg12[%224, %c0_75] : memref<128x128xf32, #tpu.memory_space<vmem>>, vector<16x128xf32>
      %226 = arith.index_cast %223 : i32 to index
      %c0_76 = arith.constant 0 : index
      %227 = vector.load %arg7[%226, %c0_76] : memref<128x1xf32, #tpu.memory_space<vmem>>, vector<16x1xf32>
      %228 = arith.index_cast %223 : i32 to index
      %c0_77 = arith.constant 0 : index
      %229 = vector.load %arg9[%228, %c0_77] : memref<128x1xi32, #tpu.memory_space<vmem>>, vector<16x1xi32>
      %230 = vector.broadcast %227 : vector<16x1xf32> to vector<16x128xf32>
      %231 = vector.broadcast %16 : vector<1x128xf32> to vector<16x128xf32>
      %232 = arith.addf %230, %231 : vector<16x128xf32>
      %cst_78 = arith.constant 2.000000e+00 : f32
      %233 = vector.broadcast %cst_78 : f32 to vector<16x128xf32>
      %234 = arith.mulf %233, %225 : vector<16x128xf32>
      %235 = arith.subf %232, %234 : vector<16x128xf32>
      %cst_79 = arith.constant 0.000000e+00 : f32
      %236 = vector.broadcast %cst_79 : f32 to vector<16x128xf32>
      %237 = arith.maximumf %235, %236 : vector<16x128xf32>
      %238 = math.sqrt %237 : vector<16x128xf32>
      %cst_80 = arith.constant 1.000000e+00 : f32
      %239 = vector.broadcast %cst_80 : f32 to vector<16x128xf32>
      %240 = arith.subf %239, %238 : vector<16x128xf32>
      %cst_81 = arith.constant 0.000000e+00 : f32
      %241 = vector.broadcast %cst_81 : f32 to vector<16x128xf32>
      %242 = arith.maximumf %240, %241 : vector<16x128xf32>
      %243 = vector.broadcast %229 : vector<16x1xi32> to vector<16x128xi32>
      %244 = vector.broadcast %17 : vector<1x128xi32> to vector<16x128xi32>
      %245 = arith.cmpi eq, %243, %244 : vector<16x128xi32>
      %246 = arith.mulf %242, %242 : vector<16x128xf32>
      %247 = arith.select %245, %237, %246 : vector<16x128xi1>, vector<16x128xf32>
      %248 = vector.shape_cast %247 : vector<16x128xf32> to vector<2x8x128xf32>
      %cst_82 = arith.constant dense<0.000000e+00> : vector<8x128xf32>
      %249 = vector.multi_reduction <add>, %248, %cst_82 [0] : vector<2x8x128xf32> to vector<8x128xf32>
      %250 = arith.addf %221, %249 : vector<8x128xf32>
      %c8_i32 = arith.constant 8 : i32
      %c0_83 = arith.constant 0 : index
      %c0_84 = arith.constant 0 : index
      %c0_85 = arith.constant 0 : index
      %251 = vector.load %arg11[%c0_83, %c0_84, %c0_85] : memref<1x8x128xf32, #tpu.memory_space<vmem>>, vector<1x8x128xf32>
      %252 = vector.shape_cast %250 : vector<8x128xf32> to vector<1x8x128xf32>
      %253 = arith.addf %251, %252 : vector<1x8x128xf32>
      %c0_86 = arith.constant 0 : index
      %c0_87 = arith.constant 0 : index
      %c0_88 = arith.constant 0 : index
      %254 = vector.load %arg11[%c0_86, %c0_87, %c0_88] : memref<1x8x128xf32, #tpu.memory_space<vmem>>, vector<1x8x128xf32>
      tpu.vector_store %arg11[%c0_86, %c0_87, %c0_88], %253 {strides = array<i32>} : memref<1x8x128xf32, #tpu.memory_space<vmem>>, vector<1x8x128xf32>,
    } else {
    }
    %c2_i32 = arith.constant 2 : i32
    %13 = arith.cmpi eq, %3, %c2_i32 : i32
    %14 = arith.extui %13 : i1 to i32
    %c0_i32_5 = arith.constant 0 : i32
    %15 = arith.cmpi ne, %14, %c0_i32_5 : i32
    scf.if %15 {
      %c0 = arith.constant 0 : index
      %c0_6 = arith.constant 0 : index
      %16 = vector.load %arg8[%c0, %c0_6] : memref<1x128xf32, #tpu.memory_space<vmem>>, vector<1x128xf32>
      %c0_7 = arith.constant 0 : index
      %c0_8 = arith.constant 0 : index
      %17 = vector.load %arg10[%c0_7, %c0_8] : memref<1x128xi32, #tpu.memory_space<vmem>>, vector<1x128xi32>
      %18 = arith.index_cast %1 : i32 to index
      %19 = memref.load %arg3[%18] : memref<2xi32, #tpu.memory_space<smem>>
      %c128_i32 = arith.constant 128 : i32
      %20 = arith.muli %19, %c128_i32 : i32
      %21 = tpu.iota {dimensions = array<i32: 1>} : vector<1x128xi32>
      %22 = vector.broadcast %20 : i32 to vector<1x128xi32>
      %23 = arith.addi %22, %21 : vector<1x128xi32>
      %24 = arith.index_cast %1 : i32 to index
      %25 = memref.load %arg2[%24] : memref<2xi32, #tpu.memory_space<smem>>
      %c128_i32_9 = arith.constant 128 : i32
      %26 = arith.muli %25, %c128_i32_9 : i32
      %cst = arith.constant 0.000000e+00 : f32
      %27 = vector.broadcast %cst : f32 to vector<8x128xf32>
      %c0_i32_10 = arith.constant 0 : i32
      %c16_i32 = arith.constant 16 : i32
      %28 = arith.muli %c0_i32_10, %c16_i32 : i32
      %29 = tpu.assume_multiple %28, 16 : i32
      %30 = arith.index_cast %29 : i32 to index
      %c0_11 = arith.constant 0 : index
      %31 = vector.load %arg12[%30, %c0_11] : memref<128x128xf32, #tpu.memory_space<vmem>>, vector<16x128xf32>
      %32 = arith.index_cast %29 : i32 to index
      %c0_12 = arith.constant 0 : index
      %33 = vector.load %arg7[%32, %c0_12] : memref<128x1xf32, #tpu.memory_space<vmem>>, vector<16x1xf32>
      %34 = arith.index_cast %29 : i32 to index
      %c0_13 = arith.constant 0 : index
      %35 = vector.load %arg9[%34, %c0_13] : memref<128x1xi32, #tpu.memory_space<vmem>>, vector<16x1xi32>
      %36 = vector.broadcast %33 : vector<16x1xf32> to vector<16x128xf32>
      %37 = vector.broadcast %16 : vector<1x128xf32> to vector<16x128xf32>
      %38 = arith.addf %36, %37 : vector<16x128xf32>
      %cst_14 = arith.constant 2.000000e+00 : f32
      %39 = vector.broadcast %cst_14 : f32 to vector<16x128xf32>
      %40 = arith.mulf %39, %31 : vector<16x128xf32>
      %41 = arith.subf %38, %40 : vector<16x128xf32>
      %cst_15 = arith.constant 0.000000e+00 : f32
      %42 = vector.broadcast %cst_15 : f32 to vector<16x128xf32>
      %43 = arith.maximumf %41, %42 : vector<16x128xf32>
      %44 = math.sqrt %43 : vector<16x128xf32>
      %cst_16 = arith.constant 1.000000e+00 : f32
      %45 = vector.broadcast %cst_16 : f32 to vector<16x128xf32>
      %46 = arith.subf %45, %44 : vector<16x128xf32>
      %cst_17 = arith.constant 0.000000e+00 : f32
      %47 = vector.broadcast %cst_17 : f32 to vector<16x128xf32>
      %48 = arith.maximumf %46, %47 : vector<16x128xf32>
      %49 = vector.broadcast %35 : vector<16x1xi32> to vector<16x128xi32>
      %50 = vector.broadcast %17 : vector<1x128xi32> to vector<16x128xi32>
      %51 = arith.cmpi eq, %49, %50 : vector<16x128xi32>
      %52 = arith.mulf %48, %48 : vector<16x128xf32>
      %53 = arith.select %51, %43, %52 : vector<16x128xi1>, vector<16x128xf32>
      %54 = arith.addi %26, %29 : i32
      %55 = tpu.iota {dimensions = array<i32: 0>} : vector<16x1xi32>
      %56 = vector.broadcast %54 : i32 to vector<16x1xi32>
      %57 = arith.addi %56, %55 : vector<16x1xi32>
      %58 = vector.broadcast %57 : vector<16x1xi32> to vector<16x128xi32>
      %59 = vector.broadcast %23 : vector<1x128xi32> to vector<16x128xi32>
      %60 = arith.cmpi slt, %58, %59 : vector<16x128xi32>
      %cst_18 = arith.constant 0.000000e+00 : f32
      %61 = vector.broadcast %cst_18 : f32 to vector<16x128xf32>
      %62 = arith.select %60, %53, %61 : vector<16x128xi1>, vector<16x128xf32>
      %63 = vector.shape_cast %62 : vector<16x128xf32> to vector<2x8x128xf32>
      %cst_19 = arith.constant dense<0.000000e+00> : vector<8x128xf32>
      %64 = vector.multi_reduction <add>, %63, %cst_19 [0] : vector<2x8x128xf32> to vector<8x128xf32>
      %65 = arith.addf %27, %64 : vector<8x128xf32>
      %c1_i32_20 = arith.constant 1 : i32
      %c16_i32_21 = arith.constant 16 : i32
      %66 = arith.muli %c1_i32_20, %c16_i32_21 : i32
      %67 = tpu.assume_multiple %66, 16 : i32
      %68 = arith.index_cast %67 : i32 to index
      %c0_22 = arith.constant 0 : index
      %69 = vector.load %arg12[%68, %c0_22] : memref<128x128xf32, #tpu.memory_space<vmem>>, vector<16x128xf32>
      %70 = arith.index_cast %67 : i32 to index
      %c0_23 = arith.constant 0 : index
      %71 = vector.load %arg7[%70, %c0_23] : memref<128x1xf32, #tpu.memory_space<vmem>>, vector<16x1xf32>
      %72 = arith.index_cast %67 : i32 to index
      %c0_24 = arith.constant 0 : index
      %73 = vector.load %arg9[%72, %c0_24] : memref<128x1xi32, #tpu.memory_space<vmem>>, vector<16x1xi32>
      %74 = vector.broadcast %71 : vector<16x1xf32> to vector<16x128xf32>
      %75 = vector.broadcast %16 : vector<1x128xf32> to vector<16x128xf32>
      %76 = arith.addf %74, %75 : vector<16x128xf32>
      %cst_25 = arith.constant 2.000000e+00 : f32
      %77 = vector.broadcast %cst_25 : f32 to vector<16x128xf32>
      %78 = arith.mulf %77, %69 : vector<16x128xf32>
      %79 = arith.subf %76, %78 : vector<16x128xf32>
      %cst_26 = arith.constant 0.000000e+00 : f32
      %80 = vector.broadcast %cst_26 : f32 to vector<16x128xf32>
      %81 = arith.maximumf %79, %80 : vector<16x128xf32>
      %82 = math.sqrt %81 : vector<16x128xf32>
      %cst_27 = arith.constant 1.000000e+00 : f32
      %83 = vector.broadcast %cst_27 : f32 to vector<16x128xf32>
      %84 = arith.subf %83, %82 : vector<16x128xf32>
      %cst_28 = arith.constant 0.000000e+00 : f32
      %85 = vector.broadcast %cst_28 : f32 to vector<16x128xf32>
      %86 = arith.maximumf %84, %85 : vector<16x128xf32>
      %87 = vector.broadcast %73 : vector<16x1xi32> to vector<16x128xi32>
      %88 = vector.broadcast %17 : vector<1x128xi32> to vector<16x128xi32>
      %89 = arith.cmpi eq, %87, %88 : vector<16x128xi32>
      %90 = arith.mulf %86, %86 : vector<16x128xf32>
      %91 = arith.select %89, %81, %90 : vector<16x128xi1>, vector<16x128xf32>
      %92 = arith.addi %26, %67 : i32
      %93 = tpu.iota {dimensions = array<i32: 0>} : vector<16x1xi32>
      %94 = vector.broadcast %92 : i32 to vector<16x1xi32>
      %95 = arith.addi %94, %93 : vector<16x1xi32>
      %96 = vector.broadcast %95 : vector<16x1xi32> to vector<16x128xi32>
      %97 = vector.broadcast %23 : vector<1x128xi32> to vector<16x128xi32>
      %98 = arith.cmpi slt, %96, %97 : vector<16x128xi32>
      %cst_29 = arith.constant 0.000000e+00 : f32
      %99 = vector.broadcast %cst_29 : f32 to vector<16x128xf32>
      %100 = arith.select %98, %91, %99 : vector<16x128xi1>, vector<16x128xf32>
      %101 = vector.shape_cast %100 : vector<16x128xf32> to vector<2x8x128xf32>
      %cst_30 = arith.constant dense<0.000000e+00> : vector<8x128xf32>
      %102 = vector.multi_reduction <add>, %101, %cst_30 [0] : vector<2x8x128xf32> to vector<8x128xf32>
      %103 = arith.addf %65, %102 : vector<8x128xf32>
      %c2_i32_31 = arith.constant 2 : i32
      %c16_i32_32 = arith.constant 16 : i32
      %104 = arith.muli %c2_i32_31, %c16_i32_32 : i32
      %105 = tpu.assume_multiple %104, 16 : i32
      %106 = arith.index_cast %105 : i32 to index
      %c0_33 = arith.constant 0 : index
      %107 = vector.load %arg12[%106, %c0_33] : memref<128x128xf32, #tpu.memory_space<vmem>>, vector<16x128xf32>
      %108 = arith.index_cast %105 : i32 to index
      %c0_34 = arith.constant 0 : index
      %109 = vector.load %arg7[%108, %c0_34] : memref<128x1xf32, #tpu.memory_space<vmem>>, vector<16x1xf32>
      %110 = arith.index_cast %105 : i32 to index
      %c0_35 = arith.constant 0 : index
      %111 = vector.load %arg9[%110, %c0_35] : memref<128x1xi32, #tpu.memory_space<vmem>>, vector<16x1xi32>
      %112 = vector.broadcast %109 : vector<16x1xf32> to vector<16x128xf32>
      %113 = vector.broadcast %16 : vector<1x128xf32> to vector<16x128xf32>
      %114 = arith.addf %112, %113 : vector<16x128xf32>
      %cst_36 = arith.constant 2.000000e+00 : f32
      %115 = vector.broadcast %cst_36 : f32 to vector<16x128xf32>
      %116 = arith.mulf %115, %107 : vector<16x128xf32>
      %117 = arith.subf %114, %116 : vector<16x128xf32>
      %cst_37 = arith.constant 0.000000e+00 : f32
      %118 = vector.broadcast %cst_37 : f32 to vector<16x128xf32>
      %119 = arith.maximumf %117, %118 : vector<16x128xf32>
      %120 = math.sqrt %119 : vector<16x128xf32>
      %cst_38 = arith.constant 1.000000e+00 : f32
      %121 = vector.broadcast %cst_38 : f32 to vector<16x128xf32>
      %122 = arith.subf %121, %120 : vector<16x128xf32>
      %cst_39 = arith.constant 0.000000e+00 : f32
      %123 = vector.broadcast %cst_39 : f32 to vector<16x128xf32>
      %124 = arith.maximumf %122, %123 : vector<16x128xf32>
      %125 = vector.broadcast %111 : vector<16x1xi32> to vector<16x128xi32>
      %126 = vector.broadcast %17 : vector<1x128xi32> to vector<16x128xi32>
      %127 = arith.cmpi eq, %125, %126 : vector<16x128xi32>
      %128 = arith.mulf %124, %124 : vector<16x128xf32>
      %129 = arith.select %127, %119, %128 : vector<16x128xi1>, vector<16x128xf32>
      %130 = arith.addi %26, %105 : i32
      %131 = tpu.iota {dimensions = array<i32: 0>} : vector<16x1xi32>
      %132 = vector.broadcast %130 : i32 to vector<16x1xi32>
      %133 = arith.addi %132, %131 : vector<16x1xi32>
      %134 = vector.broadcast %133 : vector<16x1xi32> to vector<16x128xi32>
      %135 = vector.broadcast %23 : vector<1x128xi32> to vector<16x128xi32>
      %136 = arith.cmpi slt, %134, %135 : vector<16x128xi32>
      %cst_40 = arith.constant 0.000000e+00 : f32
      %137 = vector.broadcast %cst_40 : f32 to vector<16x128xf32>
      %138 = arith.select %136, %129, %137 : vector<16x128xi1>, vector<16x128xf32>
      %139 = vector.shape_cast %138 : vector<16x128xf32> to vector<2x8x128xf32>
      %cst_41 = arith.constant dense<0.000000e+00> : vector<8x128xf32>
      %140 = vector.multi_reduction <add>, %139, %cst_41 [0] : vector<2x8x128xf32> to vector<8x128xf32>
      %141 = arith.addf %103, %140 : vector<8x128xf32>
      %c3_i32 = arith.constant 3 : i32
      %c16_i32_42 = arith.constant 16 : i32
      %142 = arith.muli %c3_i32, %c16_i32_42 : i32
      %143 = tpu.assume_multiple %142, 16 : i32
      %144 = arith.index_cast %143 : i32 to index
      %c0_43 = arith.constant 0 : index
      %145 = vector.load %arg12[%144, %c0_43] : memref<128x128xf32, #tpu.memory_space<vmem>>, vector<16x128xf32>
      %146 = arith.index_cast %143 : i32 to index
      %c0_44 = arith.constant 0 : index
      %147 = vector.load %arg7[%146, %c0_44] : memref<128x1xf32, #tpu.memory_space<vmem>>, vector<16x1xf32>
      %148 = arith.index_cast %143 : i32 to index
      %c0_45 = arith.constant 0 : index
      %149 = vector.load %arg9[%148, %c0_45] : memref<128x1xi32, #tpu.memory_space<vmem>>, vector<16x1xi32>
      %150 = vector.broadcast %147 : vector<16x1xf32> to vector<16x128xf32>
      %151 = vector.broadcast %16 : vector<1x128xf32> to vector<16x128xf32>
      %152 = arith.addf %150, %151 : vector<16x128xf32>
      %cst_46 = arith.constant 2.000000e+00 : f32
      %153 = vector.broadcast %cst_46 : f32 to vector<16x128xf32>
      %154 = arith.mulf %153, %145 : vector<16x128xf32>
      %155 = arith.subf %152, %154 : vector<16x128xf32>
      %cst_47 = arith.constant 0.000000e+00 : f32
      %156 = vector.broadcast %cst_47 : f32 to vector<16x128xf32>
      %157 = arith.maximumf %155, %156 : vector<16x128xf32>
      %158 = math.sqrt %157 : vector<16x128xf32>
      %cst_48 = arith.constant 1.000000e+00 : f32
      %159 = vector.broadcast %cst_48 : f32 to vector<16x128xf32>
      %160 = arith.subf %159, %158 : vector<16x128xf32>
      %cst_49 = arith.constant 0.000000e+00 : f32
      %161 = vector.broadcast %cst_49 : f32 to vector<16x128xf32>
      %162 = arith.maximumf %160, %161 : vector<16x128xf32>
      %163 = vector.broadcast %149 : vector<16x1xi32> to vector<16x128xi32>
      %164 = vector.broadcast %17 : vector<1x128xi32> to vector<16x128xi32>
      %165 = arith.cmpi eq, %163, %164 : vector<16x128xi32>
      %166 = arith.mulf %162, %162 : vector<16x128xf32>
      %167 = arith.select %165, %157, %166 : vector<16x128xi1>, vector<16x128xf32>
      %168 = arith.addi %26, %143 : i32
      %169 = tpu.iota {dimensions = array<i32: 0>} : vector<16x1xi32>
      %170 = vector.broadcast %168 : i32 to vector<16x1xi32>
      %171 = arith.addi %170, %169 : vector<16x1xi32>
      %172 = vector.broadcast %171 : vector<16x1xi32> to vector<16x128xi32>
      %173 = vector.broadcast %23 : vector<1x128xi32> to vector<16x128xi32>
      %174 = arith.cmpi slt, %172, %173 : vector<16x128xi32>
      %cst_50 = arith.constant 0.000000e+00 : f32
      %175 = vector.broadcast %cst_50 : f32 to vector<16x128xf32>
      %176 = arith.select %174, %167, %175 : vector<16x128xi1>, vector<16x128xf32>
      %177 = vector.shape_cast %176 : vector<16x128xf32> to vector<2x8x128xf32>
      %cst_51 = arith.constant dense<0.000000e+00> : vector<8x128xf32>
      %178 = vector.multi_reduction <add>, %177, %cst_51 [0] : vector<2x8x128xf32> to vector<8x128xf32>
      %179 = arith.addf %141, %178 : vector<8x128xf32>
      %c4_i32 = arith.constant 4 : i32
      %c16_i32_52 = arith.constant 16 : i32
      %180 = arith.muli %c4_i32, %c16_i32_52 : i32
      %181 = tpu.assume_multiple %180, 16 : i32
      %182 = arith.index_cast %181 : i32 to index
      %c0_53 = arith.constant 0 : index
      %183 = vector.load %arg12[%182, %c0_53] : memref<128x128xf32, #tpu.memory_space<vmem>>, vector<16x128xf32>
      %184 = arith.index_cast %181 : i32 to index
      %c0_54 = arith.constant 0 : index
      %185 = vector.load %arg7[%184, %c0_54] : memref<128x1xf32, #tpu.memory_space<vmem>>, vector<16x1xf32>
      %186 = arith.index_cast %181 : i32 to index
      %c0_55 = arith.constant 0 : index
      %187 = vector.load %arg9[%186, %c0_55] : memref<128x1xi32, #tpu.memory_space<vmem>>, vector<16x1xi32>
      %188 = vector.broadcast %185 : vector<16x1xf32> to vector<16x128xf32>
      %189 = vector.broadcast %16 : vector<1x128xf32> to vector<16x128xf32>
      %190 = arith.addf %188, %189 : vector<16x128xf32>
      %cst_56 = arith.constant 2.000000e+00 : f32
      %191 = vector.broadcast %cst_56 : f32 to vector<16x128xf32>
      %192 = arith.mulf %191, %183 : vector<16x128xf32>
      %193 = arith.subf %190, %192 : vector<16x128xf32>
      %cst_57 = arith.constant 0.000000e+00 : f32
      %194 = vector.broadcast %cst_57 : f32 to vector<16x128xf32>
      %195 = arith.maximumf %193, %194 : vector<16x128xf32>
      %196 = math.sqrt %195 : vector<16x128xf32>
      %cst_58 = arith.constant 1.000000e+00 : f32
      %197 = vector.broadcast %cst_58 : f32 to vector<16x128xf32>
      %198 = arith.subf %197, %196 : vector<16x128xf32>
      %cst_59 = arith.constant 0.000000e+00 : f32
      %199 = vector.broadcast %cst_59 : f32 to vector<16x128xf32>
      %200 = arith.maximumf %198, %199 : vector<16x128xf32>
      %201 = vector.broadcast %187 : vector<16x1xi32> to vector<16x128xi32>
      %202 = vector.broadcast %17 : vector<1x128xi32> to vector<16x128xi32>
      %203 = arith.cmpi eq, %201, %202 : vector<16x128xi32>
      %204 = arith.mulf %200, %200 : vector<16x128xf32>
      %205 = arith.select %203, %195, %204 : vector<16x128xi1>, vector<16x128xf32>
      %206 = arith.addi %26, %181 : i32
      %207 = tpu.iota {dimensions = array<i32: 0>} : vector<16x1xi32>
      %208 = vector.broadcast %206 : i32 to vector<16x1xi32>
      %209 = arith.addi %208, %207 : vector<16x1xi32>
      %210 = vector.broadcast %209 : vector<16x1xi32> to vector<16x128xi32>
      %211 = vector.broadcast %23 : vector<1x128xi32> to vector<16x128xi32>
      %212 = arith.cmpi slt, %210, %211 : vector<16x128xi32>
      %cst_60 = arith.constant 0.000000e+00 : f32
      %213 = vector.broadcast %cst_60 : f32 to vector<16x128xf32>
      %214 = arith.select %212, %205, %213 : vector<16x128xi1>, vector<16x128xf32>
      %215 = vector.shape_cast %214 : vector<16x128xf32> to vector<2x8x128xf32>
      %cst_61 = arith.constant dense<0.000000e+00> : vector<8x128xf32>
      %216 = vector.multi_reduction <add>, %215, %cst_61 [0] : vector<2x8x128xf32> to vector<8x128xf32>
      %217 = arith.addf %179, %216 : vector<8x128xf32>
      %c5_i32 = arith.constant 5 : i32
      %c16_i32_62 = arith.constant 16 : i32
      %218 = arith.muli %c5_i32, %c16_i32_62 : i32
      %219 = tpu.assume_multiple %218, 16 : i32
      %220 = arith.index_cast %219 : i32 to index
      %c0_63 = arith.constant 0 : index
      %221 = vector.load %arg12[%220, %c0_63] : memref<128x128xf32, #tpu.memory_space<vmem>>, vector<16x128xf32>
      %222 = arith.index_cast %219 : i32 to index
      %c0_64 = arith.constant 0 : index
      %223 = vector.load %arg7[%222, %c0_64] : memref<128x1xf32, #tpu.memory_space<vmem>>, vector<16x1xf32>
      %224 = arith.index_cast %219 : i32 to index
      %c0_65 = arith.constant 0 : index
      %225 = vector.load %arg9[%224, %c0_65] : memref<128x1xi32, #tpu.memory_space<vmem>>, vector<16x1xi32>
      %226 = vector.broadcast %223 : vector<16x1xf32> to vector<16x128xf32>
      %227 = vector.broadcast %16 : vector<1x128xf32> to vector<16x128xf32>
      %228 = arith.addf %226, %227 : vector<16x128xf32>
      %cst_66 = arith.constant 2.000000e+00 : f32
      %229 = vector.broadcast %cst_66 : f32 to vector<16x128xf32>
      %230 = arith.mulf %229, %221 : vector<16x128xf32>
      %231 = arith.subf %228, %230 : vector<16x128xf32>
      %cst_67 = arith.constant 0.000000e+00 : f32
      %232 = vector.broadcast %cst_67 : f32 to vector<16x128xf32>
      %233 = arith.maximumf %231, %232 : vector<16x128xf32>
      %234 = math.sqrt %233 : vector<16x128xf32>
      %cst_68 = arith.constant 1.000000e+00 : f32
      %235 = vector.broadcast %cst_68 : f32 to vector<16x128xf32>
      %236 = arith.subf %235, %234 : vector<16x128xf32>
      %cst_69 = arith.constant 0.000000e+00 : f32
      %237 = vector.broadcast %cst_69 : f32 to vector<16x128xf32>
      %238 = arith.maximumf %236, %237 : vector<16x128xf32>
      %239 = vector.broadcast %225 : vector<16x1xi32> to vector<16x128xi32>
      %240 = vector.broadcast %17 : vector<1x128xi32> to vector<16x128xi32>
      %241 = arith.cmpi eq, %239, %240 : vector<16x128xi32>
      %242 = arith.mulf %238, %238 : vector<16x128xf32>
      %243 = arith.select %241, %233, %242 : vector<16x128xi1>, vector<16x128xf32>
      %244 = arith.addi %26, %219 : i32
      %245 = tpu.iota {dimensions = array<i32: 0>} : vector<16x1xi32>
      %246 = vector.broadcast %244 : i32 to vector<16x1xi32>
      %247 = arith.addi %246, %245 : vector<16x1xi32>
      %248 = vector.broadcast %247 : vector<16x1xi32> to vector<16x128xi32>
      %249 = vector.broadcast %23 : vector<1x128xi32> to vector<16x128xi32>
      %250 = arith.cmpi slt, %248, %249 : vector<16x128xi32>
      %cst_70 = arith.constant 0.000000e+00 : f32
      %251 = vector.broadcast %cst_70 : f32 to vector<16x128xf32>
      %252 = arith.select %250, %243, %251 : vector<16x128xi1>, vector<16x128xf32>
      %253 = vector.shape_cast %252 : vector<16x128xf32> to vector<2x8x128xf32>
      %cst_71 = arith.constant dense<0.000000e+00> : vector<8x128xf32>
      %254 = vector.multi_reduction <add>, %253, %cst_71 [0] : vector<2x8x128xf32> to vector<8x128xf32>
      %255 = arith.addf %217, %254 : vector<8x128xf32>
      %c6_i32 = arith.constant 6 : i32
      %c16_i32_72 = arith.constant 16 : i32
      %256 = arith.muli %c6_i32, %c16_i32_72 : i32
      %257 = tpu.assume_multiple %256, 16 : i32
      %258 = arith.index_cast %257 : i32 to index
      %c0_73 = arith.constant 0 : index
      %259 = vector.load %arg12[%258, %c0_73] : memref<128x128xf32, #tpu.memory_space<vmem>>, vector<16x128xf32>
      %260 = arith.index_cast %257 : i32 to index
      %c0_74 = arith.constant 0 : index
      %261 = vector.load %arg7[%260, %c0_74] : memref<128x1xf32, #tpu.memory_space<vmem>>, vector<16x1xf32>
      %262 = arith.index_cast %257 : i32 to index
      %c0_75 = arith.constant 0 : index
      %263 = vector.load %arg9[%262, %c0_75] : memref<128x1xi32, #tpu.memory_space<vmem>>, vector<16x1xi32>
      %264 = vector.broadcast %261 : vector<16x1xf32> to vector<16x128xf32>
      %265 = vector.broadcast %16 : vector<1x128xf32> to vector<16x128xf32>
      %266 = arith.addf %264, %265 : vector<16x128xf32>
      %cst_76 = arith.constant 2.000000e+00 : f32
      %267 = vector.broadcast %cst_76 : f32 to vector<16x128xf32>
      %268 = arith.mulf %267, %259 : vector<16x128xf32>
      %269 = arith.subf %266, %268 : vector<16x128xf32>
      %cst_77 = arith.constant 0.000000e+00 : f32
      %270 = vector.broadcast %cst_77 : f32 to vector<16x128xf32>
      %271 = arith.maximumf %269, %270 : vector<16x128xf32>
      %272 = math.sqrt %271 : vector<16x128xf32>
      %cst_78 = arith.constant 1.000000e+00 : f32
      %273 = vector.broadcast %cst_78 : f32 to vector<16x128xf32>
      %274 = arith.subf %273, %272 : vector<16x128xf32>
      %cst_79 = arith.constant 0.000000e+00 : f32
      %275 = vector.broadcast %cst_79 : f32 to vector<16x128xf32>
      %276 = arith.maximumf %274, %275 : vector<16x128xf32>
      %277 = vector.broadcast %263 : vector<16x1xi32> to vector<16x128xi32>
      %278 = vector.broadcast %17 : vector<1x128xi32> to vector<16x128xi32>
      %279 = arith.cmpi eq, %277, %278 : vector<16x128xi32>
      %280 = arith.mulf %276, %276 : vector<16x128xf32>
      %281 = arith.select %279, %271, %280 : vector<16x128xi1>, vector<16x128xf32>
      %282 = arith.addi %26, %257 : i32
      %283 = tpu.iota {dimensions = array<i32: 0>} : vector<16x1xi32>
      %284 = vector.broadcast %282 : i32 to vector<16x1xi32>
      %285 = arith.addi %284, %283 : vector<16x1xi32>
      %286 = vector.broadcast %285 : vector<16x1xi32> to vector<16x128xi32>
      %287 = vector.broadcast %23 : vector<1x128xi32> to vector<16x128xi32>
      %288 = arith.cmpi slt, %286, %287 : vector<16x128xi32>
      %cst_80 = arith.constant 0.000000e+00 : f32
      %289 = vector.broadcast %cst_80 : f32 to vector<16x128xf32>
      %290 = arith.select %288, %281, %289 : vector<16x128xi1>, vector<16x128xf32>
      %291 = vector.shape_cast %290 : vector<16x128xf32> to vector<2x8x128xf32>
      %cst_81 = arith.constant dense<0.000000e+00> : vector<8x128xf32>
      %292 = vector.multi_reduction <add>, %291, %cst_81 [0] : vector<2x8x128xf32> to vector<8x128xf32>
      %293 = arith.addf %255, %292 : vector<8x128xf32>
      %c7_i32 = arith.constant 7 : i32
      %c16_i32_82 = arith.constant 16 : i32
      %294 = arith.muli %c7_i32, %c16_i32_82 : i32
      %295 = tpu.assume_multiple %294, 16 : i32
      %296 = arith.index_cast %295 : i32 to index
      %c0_83 = arith.constant 0 : index
      %297 = vector.load %arg12[%296, %c0_83] : memref<128x128xf32, #tpu.memory_space<vmem>>, vector<16x128xf32>
      %298 = arith.index_cast %295 : i32 to index
      %c0_84 = arith.constant 0 : index
      %299 = vector.load %arg7[%298, %c0_84] : memref<128x1xf32, #tpu.memory_space<vmem>>, vector<16x1xf32>
      %300 = arith.index_cast %295 : i32 to index
      %c0_85 = arith.constant 0 : index
      %301 = vector.load %arg9[%300, %c0_85] : memref<128x1xi32, #tpu.memory_space<vmem>>, vector<16x1xi32>
      %302 = vector.broadcast %299 : vector<16x1xf32> to vector<16x128xf32>
      %303 = vector.broadcast %16 : vector<1x128xf32> to vector<16x128xf32>
      %304 = arith.addf %302, %303 : vector<16x128xf32>
      %cst_86 = arith.constant 2.000000e+00 : f32
      %305 = vector.broadcast %cst_86 : f32 to vector<16x128xf32>
      %306 = arith.mulf %305, %297 : vector<16x128xf32>
      %307 = arith.subf %304, %306 : vector<16x128xf32>
      %cst_87 = arith.constant 0.000000e+00 : f32
      %308 = vector.broadcast %cst_87 : f32 to vector<16x128xf32>
      %309 = arith.maximumf %307, %308 : vector<16x128xf32>
      %310 = math.sqrt %309 : vector<16x128xf32>
      %cst_88 = arith.constant 1.000000e+00 : f32
      %311 = vector.broadcast %cst_88 : f32 to vector<16x128xf32>
      %312 = arith.subf %311, %310 : vector<16x128xf32>
      %cst_89 = arith.constant 0.000000e+00 : f32
      %313 = vector.broadcast %cst_89 : f32 to vector<16x128xf32>
      %314 = arith.maximumf %312, %313 : vector<16x128xf32>
      %315 = vector.broadcast %301 : vector<16x1xi32> to vector<16x128xi32>
      %316 = vector.broadcast %17 : vector<1x128xi32> to vector<16x128xi32>
      %317 = arith.cmpi eq, %315, %316 : vector<16x128xi32>
      %318 = arith.mulf %314, %314 : vector<16x128xf32>
      %319 = arith.select %317, %309, %318 : vector<16x128xi1>, vector<16x128xf32>
      %320 = arith.addi %26, %295 : i32
      %321 = tpu.iota {dimensions = array<i32: 0>} : vector<16x1xi32>
      %322 = vector.broadcast %320 : i32 to vector<16x1xi32>
      %323 = arith.addi %322, %321 : vector<16x1xi32>
      %324 = vector.broadcast %323 : vector<16x1xi32> to vector<16x128xi32>
      %325 = vector.broadcast %23 : vector<1x128xi32> to vector<16x128xi32>
      %326 = arith.cmpi slt, %324, %325 : vector<16x128xi32>
      %cst_90 = arith.constant 0.000000e+00 : f32
      %327 = vector.broadcast %cst_90 : f32 to vector<16x128xf32>
      %328 = arith.select %326, %319, %327 : vector<16x128xi1>, vector<16x128xf32>
      %329 = vector.shape_cast %328 : vector<16x128xf32> to vector<2x8x128xf32>
      %cst_91 = arith.constant dense<0.000000e+00> : vector<8x128xf32>
      %330 = vector.multi_reduction <add>, %329, %cst_91 [0] : vector<2x8x128xf32> to vector<8x128xf32>
      %331 = arith.addf %293, %330 : vector<8x128xf32>
      %c8_i32 = arith.constant 8 : i32
      %c0_92 = arith.constant 0 : index
      %c0_93 = arith.constant 0 : index
      %c0_94 = arith.constant 0 : index
      %332 = vector.load %arg11[%c0_92, %c0_93, %c0_94] : memref<1x8x128xf32, #tpu.memory_space<vmem>>, vector<1x8x128xf32>
      %333 = vector.shape_cast %331 : vector<8x128xf32> to vector<1x8x128xf32>
      %334 = arith.addf %332, %333 : vector<1x8x128xf32>
      %c0_95 = arith.constant 0 : index
      %c0_96 = arith.constant 0 : index
      %c0_97 = arith.constant 0 : index
      %335 = vector.load %arg11[%c0_95, %c0_96, %c0_97] : memref<1x8x128xf32, #tpu.memory_space<vmem>>, vector<1x8x128xf32>
      tpu.vector_store %arg11[%c0_95, %c0_96, %c0_97], %334 {strides = array<i32>} : memref<1x8x128xf32, #tpu.memory_space<vmem>>, vector<1x8x128xf32>,
    } else {
    }
    return
  }
  func.func @transform_0(%arg0: i32, %arg1: i32, %arg2: memref<2xi32, #tpu.memory_space<smem>>, %arg3: memref<2xi32, #tpu.memory_space<smem>>, %arg4: memref<2xi32, #tpu.memory_space<smem>>) -> (i32, i32) {
    %c1_i32 = arith.constant 1 : i32
    %0 = arith.muli %arg0, %c1_i32 : i32
    %1 = arith.addi %0, %arg1 : i32
    %2 = arith.index_cast %1 : i32 to index
    %3 = memref.load %arg2[%2] : memref<2xi32, #tpu.memory_space<smem>>
    %c0_i32 = arith.constant 0 : i32
    %c0_i32_0 = arith.constant 0 : i32
    return %3, %c0_i32 : i32, i32
  }
  func.func @transform_1(%arg0: i32, %arg1: i32, %arg2: memref<2xi32, #tpu.memory_space<smem>>, %arg3: memref<2xi32, #tpu.memory_space<smem>>, %arg4: memref<2xi32, #tpu.memory_space<smem>>) -> (i32, i32) {
    %c1_i32 = arith.constant 1 : i32
    %0 = arith.muli %arg0, %c1_i32 : i32
    %1 = arith.addi %0, %arg1 : i32
    %2 = arith.index_cast %1 : i32 to index
    %3 = memref.load %arg3[%2] : memref<2xi32, #tpu.memory_space<smem>>
    %c0_i32 = arith.constant 0 : i32
    %c0_i32_0 = arith.constant 0 : i32
    return %c0_i32, %3 : i32, i32
  }
  func.func @transform_2(%arg0: i32, %arg1: i32, %arg2: memref<2xi32, #tpu.memory_space<smem>>, %arg3: memref<2xi32, #tpu.memory_space<smem>>, %arg4: memref<2xi32, #tpu.memory_space<smem>>) -> (i32, i32) {
    %c1_i32 = arith.constant 1 : i32
    %0 = arith.muli %arg0, %c1_i32 : i32
    %1 = arith.addi %0, %arg1 : i32
    %2 = arith.index_cast %1 : i32 to index
    %3 = memref.load %arg2[%2] : memref<2xi32, #tpu.memory_space<smem>>
    %c0_i32 = arith.constant 0 : i32
    %c0_i32_0 = arith.constant 0 : i32
    return %3, %c0_i32 : i32, i32
  }
  func.func @transform_3(%arg0: i32, %arg1: i32, %arg2: memref<2xi32, #tpu.memory_space<smem>>, %arg3: memref<2xi32, #tpu.memory_space<smem>>, %arg4: memref<2xi32, #tpu.memory_space<smem>>) -> (i32, i32) {
    %c1_i32 = arith.constant 1 : i32
    %0 = arith.muli %arg0, %c1_i32 : i32
    %1 = arith.addi %0, %arg1 : i32
    %2 = arith.index_cast %1 : i32 to index
    %3 = memref.load %arg3[%2] : memref<2xi32, #tpu.memory_space<smem>>
    %c0_i32 = arith.constant 0 : i32
    %c0_i32_0 = arith.constant 0 : i32
    return %c0_i32, %3 : i32, i32
  }
  func.func @transform_4(%arg0: i32, %arg1: i32, %arg2: memref<2xi32, #tpu.memory_space<smem>>, %arg3: memref<2xi32, #tpu.memory_space<smem>>, %arg4: memref<2xi32, #tpu.memory_space<smem>>) -> (i32, i32) {
    %c1_i32 = arith.constant 1 : i32
    %0 = arith.muli %arg0, %c1_i32 : i32
    %1 = arith.addi %0, %arg1 : i32
    %2 = arith.index_cast %1 : i32 to index
    %3 = memref.load %arg2[%2] : memref<2xi32, #tpu.memory_space<smem>>
    %c0_i32 = arith.constant 0 : i32
    %c0_i32_0 = arith.constant 0 : i32
    return %3, %c0_i32 : i32, i32
  }
  func.func @transform_5(%arg0: i32, %arg1: i32, %arg2: memref<2xi32, #tpu.memory_space<smem>>, %arg3: memref<2xi32, #tpu.memory_space<smem>>, %arg4: memref<2xi32, #tpu.memory_space<smem>>) -> (i32, i32) {
    %c1_i32 = arith.constant 1 : i32
    %0 = arith.muli %arg0, %c1_i32 : i32
    %1 = arith.addi %0, %arg1 : i32
    %2 = arith.index_cast %1 : i32 to index
    %3 = memref.load %arg3[%2] : memref<2xi32, #tpu.memory_space<smem>>
    %c0_i32 = arith.constant 0 : i32
    %c0_i32_0 = arith.constant 0 : i32
    return %c0_i32, %3 : i32, i32
  }
  func.func @transform_6(%arg0: i32, %arg1: i32, %arg2: memref<2xi32, #tpu.memory_space<smem>>, %arg3: memref<2xi32, #tpu.memory_space<smem>>, %arg4: memref<2xi32, #tpu.memory_space<smem>>) -> (i32, i32, i32) {
    %c0_i32 = arith.constant 0 : i32
    %c0_i32_0 = arith.constant 0 : i32
    %c0_i32_1 = arith.constant 0 : i32
    return %arg0, %c0_i32, %c0_i32_0 : i32, i32, i32
  }
}

</mosaic_0001>

<bundles_post_ra>
// kernel: tpu_custom_call.1
= control target key start
LH: loop header
LB: loop body
LE: loop exit
PB: predicated region body
PF: predicated region fallthrough
CT: control target
= control target key end

     0   :  { %s3272_s0 = inlined_call_operand.vmem [shape: s32[2], index: 0, kind: input, shape index: {}]   ;;  %s3273_s3 = inlined_call_operand.vmem [shape: f32[128,32], index: 3, kind: input, shape index: {}]   ;;  %s3274_s4 = inlined_call_operand.vmem [shape: f32[32,128], index: 4, kind: input, shape index: {}]   ;;  %s3275_s5 = inlined_call_operand.vmem [shape: f32[128,1], index: 5, kind: input, shape index: {}]   ;;  %s3276_s6 = inlined_call_operand.vmem [shape: f32[1,128], index: 6, kind: input, shape index: {}]   ;;  %s3277_s7 = inlined_call_operand.vmem [shape: s32[128,1], index: 7, kind: input, shape index: {}]   ;;  %s3278_s8 = inlined_call_operand.vmem [shape: s32[1,128], index: 8, kind: input, shape index: {}]   ;;  %s3279_s9 = inlined_call_operand.hbm [shape: f32[2,8,128], index: 9, kind: output, shape index: {}]   ;;  %s3280_s1 = inlined_call_operand.vmem [shape: s32[2], index: 1, kind: input, shape index: {}]   ;;  %s3281_s2 = inlined_call_operand.vmem [shape: s32[2], index: 2, kind: input, shape index: {}]  }
   0x1   :  { %3291 = sst [smem:[#allocation18_spill]] %s3279_s9  ;;  %s14_s11 = sshll.u32 %s3272_s0, 4  ;;  %s15_s11 = int_to_ptr.vmem [resolvable:$true] %s14_s11 }
   0x2   :  { %s18_s14 = sshll.u32 %s3280_s1, 4  ;;  %s2168_s15 = scalar_lea.vmem %s15_s11, 16  ;;  %s19_s14 = int_to_ptr.vmem [resolvable:$true] %s18_s14 }
   0x3   :  { %p2169_p0 = scmp.ne.s32.totalorder %s15_s11, %s2168_s15  ;;  %p2173_p1 = scmp.lt.s32.totalorder %s15_s11, %s15_s11 }
   0x4   :  { %p2174_p2 = scmp.lt.s32.totalorder %s2168_s15, %s2168_s15 }
   0x6   :  { %p2175_p3 = por %p2174_p2, %p2173_p1 }
   0x8   :  { %p2176_p4 = pnand %p2175_p3, %p2169_p0 }
   0xa   :  { %2179 = shalt.err (!%p2176_p4)  }
   0xb   :  { %s2284_s16 = smov [#allocation4]   ;;  %s2180_s17 = scalar_lea.vmem %s19_s14, 16 }
   0xc   :  { %17 = dma.vmem_to_smem %s15_s11, 16, %s2284_s16, [#allocation3] }
   0xd   :  { %p2181_p5 = scmp.ne.s32.totalorder %s19_s14, %s2180_s17  ;;  %p2185_p6 = scmp.lt.s32.totalorder %s19_s14, %s19_s14 }
   0xe   :  { %p2186_p7 = scmp.lt.s32.totalorder %s2180_s17, %s2180_s17 }
  0x10   :  { %p2187_p8 = por %p2186_p7, %p2185_p6 }
  0x12   :  { %p2188_p9 = pnand %p2187_p8, %p2181_p5 }
  0x14   :  { %2191 = shalt.err (!%p2188_p9)  }
  0x15   :  { %s2285_s0 = smov [#allocation5]   ;;  %s22_s19 = sshll.u32 %s3281_s2, 4  ;;  %s23_s19 = int_to_ptr.vmem [resolvable:$true] %s22_s19 }
  0x16   :  { %21 = dma.vmem_to_smem %s19_s14, 16, %s2285_s0, [#allocation3] }
  0x17   :  { %s2192_s20 = scalar_lea.vmem %s23_s19, 16  ;;  %p2197_p11 = scmp.lt.s32.totalorder %s23_s19, %s23_s19 }
  0x18   :  { %p2193_p10 = scmp.ne.s32.totalorder %s23_s19, %s2192_s20  ;;  %p2198_p12 = scmp.lt.s32.totalorder %s2192_s20, %s2192_s20 }
  0x1a   :  { %p2199_p13 = por %p2198_p12, %p2197_p11 }
  0x1c   :  { %p2200_p0 = pnand %p2199_p13, %p2193_p10 }
  0x1e   :  { %2203 = shalt.err (!%p2200_p0)  }
  0x1f   :  { %s2286_s21 = smov [#allocation6]  }
  0x20   :  { %25 = dma.vmem_to_smem %s23_s19, 16, %s2286_s21, [#allocation3] }
  0x21   :  { %2254 = dma.done.wait [#allocation3], 48 }
  0x22   :  { %2255 = vsyncadd [#allocation3], 4294967248 }
  0x23   :  { %27 = sfence }
  0x24   :  { %28 = vsyncpa [#allocation8], 0 }
  0x25   :  { %30 = vsyncpa [#allocation8 + $0x1], 0  ;;  %s2350_s22 = smov 0   ;;  %s2352_s23 = smov 0  }
  0x26   :  { %s2354_s2 = smov 0   ;;  %s2356_s24 = smov 0  }
  0x27   :  { %s2358_s25 = smov 0   ;;  %s2360_s26 = smov 0  }
  0x28 LB: > { %3292 = sst [smem:[#allocation11_spill]] %s2262_s22  ;;  %s1881_s27 = sadd.s32 4294967295, %s2282_s26   ;;  %s2282_s26 = sphi %s2360_s26, %s36_s26   ;;  %s2278_s25 = sphi %s2358_s25, %s3310_s25   ;;  %s2274_s24 = sphi %s2356_s24, %s3309_s24   ;;  %s2270_s2 = sphi %s2354_s2, %s3308_s2   ;;  %s2266_s23 = sphi %s2352_s23, %s3312_s23   ;;  %s2262_s22 = sphi %s2350_s22, %s3311_s22  }
  0x29   : > { %3293 = sst [smem:[#allocation12_spill]] %s2270_s2  ;;  %s1882_s28 = sadd.s32 4294967294, %s2282_s26  }
  0x2a   : > { %3294 = sst [smem:[#allocation13_spill]] %s2278_s25  ;;  %s48_s29 = sadd.s32 1, %s2278_s25 }
  0x2b   : > { %3295 = sst [smem:[#allocation14_spill]] %s2282_s26  ;;  %s235_s30 = sadd.s32 1, %s2270_s2 }
  0x2c   : > { %p50_p1 = scmp.ge.s32.totalorder %s48_s29, 2  ;;  %p245_p2 = scmp.ne.s32.totalorder %s2270_s2, %s2266_s23 }
  0x2d   : > { %p246_p3 = scmp.eq.s32.totalorder %s1881_s27, 1  ;;  %p251_p4 = scmp.ne.s32.totalorder %s2266_s23, %s2262_s22 }
  0x2e   : > { %s3314_s29 = smov (%p50_p1, %s48_s29), 0  ;;  %p252_p6 = scmp.eq.s32.totalorder %s1882_s28, 1 }
  0x2f   : > { %3296 = sst [smem:[#allocation15_spill]] %s3314_s29  ;;  %p2390_p5 = por %p246_p3, %p245_p2 }
  0x30   : > { %s232_s11 = ssub.s32 %s2278_s25, %s3314_s29  ;;  %p1885_p7 = scmp.ge.s32.totalorder %s2282_s26, 1 }
  0x31   : > { %p233_p8 = scmp.eq.s32.totalorder %s232_s11, 0  ;;  %p2397_p9 = por %p252_p6, %p251_p4 }
  0x32   : > { %p340_p10 = scmp.lt.s32.totalorder %s2282_s26, 3 }
  0x33   : > { %s3298_s12 = scalar_select %p2397_p9, 1, 0 }
  0x34   : > { %s2403_s13 = scalar_select %p233_p8, %s2270_s2, %s235_s30  }
  0x35   : > { %3299 = sst [smem:[#allocation16_spill]] %s3298_s12  ;;  %p341_p11 = pnand %p1885_p7, %p340_p10 }
  0x36   : > { %3300 = sst [smem:[#allocation17_spill]] %s2403_s13  ;;  %s3282_s14 = sand.u32 (!%p341_p11), 1, %s2266_s23  }
  0x37   : > { %344 = sbr.rel (%p341_p11) target bundleno = 764 (0x2fc), region = 44  ;;  %s403_s15 = sld [smem:[#allocation4 + %s2274_s24]] (!%p341_p11) }
  0x38   : > { %s1886_s16 = sshll.u32 (!%p341_p11), %s3282_s14, 3  ;;  %s413_s17 = sld [smem:[#allocation5 + %s2274_s24]] (!%p341_p11) }
  0x39   : > { %s421_s0 = sld [smem:[#allocation4 + %s2274_s24]] (!%p341_p11)  ;;  %s2411_s1 = scalar_lea.vmem (!%p341_p11), [#allocation7], %s1886_s16 }
  0x3a   : > { %s431_s18 = sld [smem:[#allocation5 + %s2274_s24]] (!%p341_p11) }
  0x3b   : > { %s438_s19 = sld [smem:[#allocation4 + %s2274_s24]] (!%p341_p11) }
  0x3c   : > { %v2287_v0 = vmov 0.0   ;;  %s2417_s21 = sld [smem:[#allocation6 + %s2274_s24]] }
  0x3d   : > { %460 = vst [vmem:[%s2411_s1] sm:$0xff] %v2287_v0  ;;  %s1887_s20 = sshll.u32 %s403_s15, 4  ;;  %s448_s28 = sld [smem:[#allocation5 + %s2274_s24]] }
  0x3e   : > { %p405_p12 = scmp.lt.s32.totalorder %s1887_s20, 15  ;;  %p414_p13 = scmp.lt.s32.totalorder %s413_s17, 0 }
  0x3f   : > { %s1890_s27 = sshll.u32 %s421_s0, 4 }
  0x40   : > { %s3316_s20 = smov (!%p405_p12, %s1887_s20), 15  ;;  %s3318_s17 = smov (!%p414_p13, %s413_s17), 0 }
  0x41   : > { %s1888_s30 = sshll.u32 %s3316_s20, 3  ;;  %p423_p0 = scmp.lt.s32.totalorder %s1890_s27, 15 }
  0x42   : > { %s2423_s16 = scalar_lea.vmem %s3273_s3, %s1888_s30  ;;  %s1889_s29 = sshll.u32 %s3318_s17, 3 }
  0x43   : > { %s417_s15 = scalar_lea.vmem %s3274_s4, %s1889_s29  ;;  %p432_p1 = scmp.lt.s32.totalorder %s431_s18, 0 }
  0x44   : > { %s3320_s27 = smov (!%p423_p0, %s1890_s27), 15  ;;  %s1892_s0 = sshll.u32 %s438_s19, 4 }
  0x45   : > { %s3322_s18 = smov (!%p432_p1, %s431_s18), 0  ;;  %s1891_s2 = sshll.u32 %s3320_s27, 3 }
  0x46   : > { %s2431_s20 = scalar_lea.vmem %s3275_s5, %s1891_s2  ;;  %s2436_s14 = scalar_lea.vmem %s3276_s6, %s3322_s18 }
  0x47   : > { %p440_p2 = scmp.lt.s32.totalorder %s1892_s0, 15  ;;  %p449_p3 = scmp.lt.s32.totalorder %s448_s28, 0 }
  0x48   : > { %p1894_p4 = scmp.le.s32.totalorder %s2417_s21, 0 }
  0x49   : > { %s3324_s0 = smov (!%p440_p2, %s1892_s0), 15  ;;  %s3326_s28 = smov (!%p449_p3, %s448_s28), 0 }
  0x4a   : > { %s1893_s25 = sshll.u32 %s3324_s0, 3  ;;  %s2446_s22 = scalar_lea.vmem %s3278_s8, %s3326_s28 }
  0x4b   : > { %s2441_s17 = scalar_lea.vmem %s3277_s7, %s1893_s25  ;;  %464 = sbr.rel (%p1894_p4) target bundleno = 298 (0x12a), region = 52 }
  0x50   : > { %v484_v1 = vld [vmem:[%s417_s15 + $0x18] sm:$0xff]  ;;  %v483_v2 = vld [vmem:[%s417_s15 + $0x10] sm:$0xff]  ;;  %v482_v3 = vld [vmem:[%s417_s15 + $0x8] sm:$0xff]  ;;  %vm485_vm0 = vcmask 261120  }
  0x51   : > { %1999 = vmatprep.subr.mxu0 %v484_v1  ;;  %2031 = vmatprep.subr.mxu1 %v484_v1  ;;  %v481_v4 = vld [vmem:[%s417_s15] sm:$0xff]  ;;  %v466_v7 = vld [vmem:[%s2423_s16 + $0x8] sm:$0xff]  ;;  %v467_v9 = vld [vmem:[%s2423_s16 + $0x10] sm:$0xff] }
  0x52   : > { %2000 = vmatpush3.msra.mxu0 %v484_v1  ;;  %2035 = vmatpush3.msra.mxu1 %v484_v1  ;;  %v465_v5 = vld [vmem:[%s2423_s16] sm:$0xff]  ;;  %v474_v8 = vld [vmem:[%s2423_s16 + $0x48] sm:$0xff]  ;;  %v475_v10 = vld [vmem:[%s2423_s16 + $0x50] sm:$0xff] }
  0x53   : > { %2001 = vmatprep.subr.mxu0 %v483_v2  ;;  %2032 = vmatprep.subr.mxu1 %v483_v2  ;;  %v473_v6 = vld [vmem:[%s2423_s16 + $0x40] sm:$0xff]  ;;  %v468_v11 = vld [vmem:[%s2423_s16 + $0x18] sm:$0xff]  ;;  %v470_v15 = vld [vmem:[%s2423_s16 + $0x28] sm:$0xff] }
  0x54   : > { %2002 = vmatpush3.msra.mxu0 %v483_v2  ;;  %2036 = vmatpush3.msra.mxu1 %v483_v2  ;;  %v476_v12 = vld [vmem:[%s2423_s16 + $0x58] sm:$0xff]  ;;  %v469_v13 = vld [vmem:[%s2423_s16 + $0x20] sm:$0xff]  ;;  %v478_v16 = vld [vmem:[%s2423_s16 + $0x68] sm:$0xff] }
  0x55   : > { %2003 = vmatprep.subr.mxu0 %v482_v3  ;;  %2033 = vmatprep.subr.mxu1 %v482_v3  ;;  %v477_v14 = vld [vmem:[%s2423_s16 + $0x60] sm:$0xff]  ;;  %v471_v17 = vld [vmem:[%s2423_s16 + $0x30] sm:$0xff]  ;;  %v472_v19 = vld [vmem:[%s2423_s16 + $0x38] sm:$0xff] }
  0x56   : > { %2004 = vmatpush3.msra.mxu0 %v482_v3  ;;  %2037 = vmatpush3.msra.mxu1 %v482_v3  ;;  %v479_v18 = vld [vmem:[%s2423_s16 + $0x70] sm:$0xff]  ;;  %v480_v20 = vld [vmem:[%s2423_s16 + $0x78] sm:$0xff] }
  0x57   : > { %2005 = vmatprep.subr.mxu0 %v481_v4  ;;  %2034 = vmatprep.subr.mxu1 %v481_v4 }
  0x58   : > { %2006 = vmatpush3.msra.mxu0 %v481_v4  ;;  %2038 = vmatpush3.msra.mxu1 %v481_v4 }
  0x59   : > { %2007 = vmatprep.mubr.msk.f32.mxu0 %vm485_vm0, %v465_v5  ;;  %2019 = vmatprep.mubr.msk.f32.mxu1 %vm485_vm0, %v473_v6 }
  0x5a   : > { %2008 = vmatmul.mubr.msk.f32.vlgmr.msra.gmra.mxu0 %vm485_vm0, %v466_v7  ;;  %2020 = vmatmul.mubr.msk.f32.vlgmr.msra.gmra.mxu1 %vm485_vm0, %v474_v8 }
  0x5b   : > { %2010 = vmatprep.mubr.msk.f32.mxu0 %vm485_vm0, %v467_v9  ;;  %2022 = vmatprep.mubr.msk.f32.mxu1 %vm485_vm0, %v475_v10 }
  0x5e   : > { %2011 = vmatmul.mubr.msk.f32.gmra.mxu0 %vm485_vm0, %v468_v11  ;;  %2023 = vmatmul.mubr.msk.f32.gmra.mxu1 %vm485_vm0, %v476_v12 }
  0x5f   : > { %2013 = vmatprep.mubr.msk.f32.mxu0 %vm485_vm0, %v469_v13  ;;  %2025 = vmatprep.mubr.msk.f32.mxu1 %vm485_vm0, %v477_v14 }
  0x62   : > { %2014 = vmatmul.mubr.msk.f32.gmra.mxu0 %vm485_vm0, %v470_v15  ;;  %2026 = vmatmul.mubr.msk.f32.gmra.mxu1 %vm485_vm0, %v478_v16 }
  0x63   : > { %2016 = vmatprep.mubr.msk.f32.mxu0 %vm485_vm0, %v471_v17  ;;  %2028 = vmatprep.mubr.msk.f32.mxu1 %vm485_vm0, %v479_v18 }
  0x66   : > { %2017 = vmatmul.mubr.msk.f32.gmra.mxu0 %vm485_vm0, %v472_v19  ;;  %2029 = vmatmul.mubr.msk.f32.gmra.mxu1 %vm485_vm0, %v480_v20 }
 0x11a   : > { %v2009_v21 = vpop.f32.mrf.mxu0  ;;  %v2021_v22 = vpop.f32.mrf.mxu1 }
 0x11b   : > { %680 = vst [vmem:[#allocation2] sm:$0xff] %v2009_v21  ;;  %688 = vst [vmem:[#allocation2 + $0x20] sm:$0xff] %v2021_v22 }
 0x11c   : > { %v600_v23 = vpop.f32.mrf.mxu0  ;;  %v640_v24 = vpop.f32.mrf.mxu1 }
 0x11d   : > { %679 = vst [vmem:[#allocation2 + $0x30] sm:$0xff] %v600_v23  ;;  %687 = vst [vmem:[#allocation2 + $0x40] sm:$0xff] %v640_v24 }
 0x11e   : > { %v2012_v25 = vpop.f32.mrf.mxu0  ;;  %v2024_v26 = vpop.f32.mrf.mxu1 }
 0x11f   : > { %682 = vst [vmem:[#allocation2 + $0x18] sm:$0xff] %v2012_v25  ;;  %690 = vst [vmem:[#allocation2 + $0x38] sm:$0xff] %v2024_v26 }
 0x120   : > { %v610_v27 = vpop.f32.mrf.mxu0  ;;  %v650_v28 = vpop.f32.mrf.mxu1 }
 0x121   : > { %681 = vst [vmem:[#allocation2 + $0x58] sm:$0xff] %v610_v27  ;;  %689 = vst [vmem:[#allocation2 + $0x10] sm:$0xff] %v650_v28 }
 0x122   : > { %v2015_v29 = vpop.f32.mrf.mxu0  ;;  %v2027_v30 = vpop.f32.mrf.mxu1 }
 0x123   : > { %684 = vst [vmem:[#allocation2 + $0x68] sm:$0xff] %v2015_v29  ;;  %692 = vst [vmem:[#allocation2 + $0x70] sm:$0xff] %v2027_v30 }
 0x124   : > { %v620_v31 = vpop.f32.mrf.mxu0  ;;  %v660_v32 = vpop.f32.mrf.mxu1 }
 0x125   : > { %683 = vst [vmem:[#allocation2 + $0x50] sm:$0xff] %v620_v31  ;;  %691 = vst [vmem:[#allocation2 + $0x60] sm:$0xff] %v660_v32 }
 0x126   : > { %v2018_v33 = vpop.f32.mrf.mxu0  ;;  %v2030_v34 = vpop.f32.mrf.mxu1 }
 0x127   : > { %686 = vst [vmem:[#allocation2 + $0x48] sm:$0xff] %v2018_v33  ;;  %694 = vst [vmem:[#allocation2 + $0x28] sm:$0xff] %v2030_v34 }
 0x128   : > { %v630_v35 = vpop.f32.mrf.mxu0  ;;  %v670_v36 = vpop.f32.mrf.mxu1 }
 0x129   : > { %685 = vst [vmem:[#allocation2 + $0x8] sm:$0xff] %v630_v35  ;;  %693 = vst [vmem:[#allocation2 + $0x78] sm:$0xff] %v670_v36 }
 0x12a PF: > { %p1911_p6 = scmp.ne.s32.totalorder %s2417_s21, 1 }
 0x12c   : > { %698 = sbr.rel (%p1911_p6) target bundleno = 514 (0x202), region = 56 }
 0x131   : > { %v705_v37 = vld [vmem:[%s2441_s17] sm:$0xff]  ;;  %v2288_v39 = vmov 0   ;;  %v706_v40 = vld [vmem:[%s2441_s17 + $0x8] sm:$0xff]  ;;  %v1915_v42 = vld [vmem:[%s2431_s20 + $0x18] sm:$0xff] }
 0x132   : > { %v703_v38 = vld [vmem:[%s2431_s20] sm:$0xff]  ;;  %2101 = vset.pattern.permute.xlu1 %v2288_v39  ;;  %2100 = vset.pattern.permute.xlu0 %v2288_v39  ;;  %v704_v41 = vld [vmem:[%s2431_s20 + $0x8] sm:$0xff]  ;;  %v1914_v43 = vld [vmem:[%s2431_s20 + $0x10] sm:$0xff] }
 0x133   : > { %750 = vperm.xlu1 %2101, %v705_v37   ;;  %709 = vperm.xlu0 %2100, %v703_v38   ;;  %v1919_v44 = vld [vmem:[%s2431_s20 + $0x28] sm:$0xff]  ;;  %v1918_v45 = vld [vmem:[%s2431_s20 + $0x20] sm:$0xff]  ;;  %v1923_v46 = vld [vmem:[%s2431_s20 + $0x38] sm:$0xff] }
 0x134   : > { %v1922_v47 = vld [vmem:[%s2431_s20 + $0x30] sm:$0xff]  ;;  %v1927_v48 = vld [vmem:[%s2431_s20 + $0x48] sm:$0xff]  ;;  %v1926_v49 = vld [vmem:[%s2431_s20 + $0x40] sm:$0xff] }
 0x135   : > { %v1931_v50 = vld [vmem:[%s2431_s20 + $0x58] sm:$0xff]  ;;  %v1930_v51 = vld [vmem:[%s2431_s20 + $0x50] sm:$0xff]  ;;  %v1935_v52 = vld [vmem:[%s2431_s20 + $0x68] sm:$0xff] }
 0x136   : > { %v1934_v53 = vld [vmem:[%s2431_s20 + $0x60] sm:$0xff]  ;;  %v1939_v54 = vld [vmem:[%s2431_s20 + $0x78] sm:$0xff]  ;;  %v1938_v55 = vld [vmem:[%s2431_s20 + $0x70] sm:$0xff] }
 0x137   : > { %753 = vperm.xlu1 %2101, %v706_v40   ;;  %714 = vperm.xlu0 %2100, %v704_v41   ;;  %v1917_v56 = vld [vmem:[%s2441_s17 + $0x18] sm:$0xff]  ;;  %v1916_v57 = vld [vmem:[%s2441_s17 + $0x10] sm:$0xff]  ;;  %v1921_v58 = vld [vmem:[%s2441_s17 + $0x28] sm:$0xff] }
 0x138   : > { %v1920_v59 = vld [vmem:[%s2441_s17 + $0x20] sm:$0xff]  ;;  %v1925_v60 = vld [vmem:[%s2441_s17 + $0x38] sm:$0xff]  ;;  %v1924_v61 = vld [vmem:[%s2441_s17 + $0x30] sm:$0xff] }
 0x139   : > { %v1929_v62 = vld [vmem:[%s2441_s17 + $0x48] sm:$0xff]  ;;  %v1928_v63 = vld [vmem:[%s2441_s17 + $0x40] sm:$0xff]  ;;  %v1933_v0 = vld [vmem:[%s2441_s17 + $0x58] sm:$0xff] }
 0x13a   : > { %v1932_v1 = vld [vmem:[%s2441_s17 + $0x50] sm:$0xff]  ;;  %v1937_v2 = vld [vmem:[%s2441_s17 + $0x68] sm:$0xff]  ;;  %v1936_v3 = vld [vmem:[%s2441_s17 + $0x60] sm:$0xff] }
 0x13b   : > { %783 = vperm.xlu1 %2101, %v1915_v42   ;;  %778 = vperm.xlu0 %2100, %v1914_v43   ;;  %v1941_v4 = vld [vmem:[%s2441_s17 + $0x78] sm:$0xff]  ;;  %v1940_v5 = vld [vmem:[%s2441_s17 + $0x70] sm:$0xff]  ;;  %v2515_v7 = vld [vmem:[%s2436_s14] ss:$0 sm:$0xff] }
 0x13c   : > { %v701_v6 = vld [vmem:[#allocation2 + $0x30] sm:$0xff]  ;;  %v702_v11 = vld [vmem:[#allocation2] sm:$0xff]  ;;  %v769_v17 = vld [vmem:[#allocation2 + $0x18] sm:$0xff] }
 0x13d   : > { %v725_v8 = vmul.f32 2.0, %v701_v6  ;;  %v726_v14 = vmul.f32 2.0, %v702_v11  ;;  %v768_v18 = vld [vmem:[#allocation2 + $0x58] sm:$0xff]  ;;  %v789_v22 = vmul.f32 2.0, %v769_v17  ;;  %v828_v26 = vld [vmem:[#allocation2 + $0x68] sm:$0xff]  ;;  %v827_v30 = vld [vmem:[#allocation2 + $0x50] sm:$0xff] }
 0x13e   : > { %v788_v23 = vmul.f32 2.0, %v768_v18  ;;  %v848_v33 = vmul.f32 2.0, %v828_v26  ;;  %v847_v35 = vmul.f32 2.0, %v827_v30  ;;  %v887_v37 = vld [vmem:[#allocation2 + $0x48] sm:$0xff]  ;;  %v946_v43 = vld [vmem:[#allocation2 + $0x20] sm:$0xff] }
 0x13f   : > { %842 = vperm.xlu1 %2101, %v1919_v44   ;;  %837 = vperm.xlu0 %2100, %v1918_v45   ;;  %v886_v38 = vld [vmem:[#allocation2 + $0x8] sm:$0xff]  ;;  %v907_v45 = vmul.f32 2.0, %v887_v37 }
 0x143   : > { %901 = vperm.xlu1 %2101, %v1923_v46   ;;  %896 = vperm.xlu0 %2100, %v1922_v47   ;;  %v906_v46 = vmul.f32 2.0, %v886_v38  ;;  %v945_v47 = vld [vmem:[#allocation2 + $0x40] sm:$0xff] }
 0x147   : > { %960 = vperm.xlu1 %2101, %v1927_v48   ;;  %955 = vperm.xlu0 %2100, %v1926_v49   ;;  %v1005_v48 = vld [vmem:[#allocation2 + $0x38] sm:$0xff]  ;;  %v1004_v49 = vld [vmem:[#allocation2 + $0x10] sm:$0xff] }
 0x14b   : > { %1019 = vperm.xlu1 %2101, %v1931_v50   ;;  %1014 = vperm.xlu0 %2100, %v1930_v51  }
 0x14f   : > { %1078 = vperm.xlu1 %2101, %v1935_v52   ;;  %1073 = vperm.xlu0 %2100, %v1934_v53   ;;  %v1064_v53 = vld [vmem:[#allocation2 + $0x70] sm:$0xff] }
 0x153   : > { %1137 = vperm.xlu1 %2101, %v1939_v54   ;;  %1132 = vperm.xlu0 %2100, %v1938_v55   ;;  %v1063_v54 = vld [vmem:[#allocation2 + $0x60] sm:$0xff] }
 0x157   : > { %816 = vperm.xlu1 %2101, %v1917_v56   ;;  %813 = vperm.xlu0 %2100, %v1916_v57  }
 0x15b   : > { %875 = vperm.xlu1 %2101, %v1921_v58   ;;  %872 = vperm.xlu0 %2100, %v1920_v59   ;;  %v1123_v58 = vld [vmem:[#allocation2 + $0x28] sm:$0xff]  ;;  %v1122_v59 = vld [vmem:[#allocation2 + $0x78] sm:$0xff] }
 0x15c   : > { %v2554_v11 = vmul.f32 2.0, %v1122_v59 }
 0x15f   : > { %934 = vperm.xlu1 %2101, %v1925_v60   ;;  %931 = vperm.xlu0 %2100, %v1924_v61   ;;  %v966_v60 = vmul.f32 2.0, %v946_v43  ;;  %v965_v61 = vmul.f32 2.0, %v945_v47 }
 0x163   : > { %993 = vperm.xlu1 %2101, %v1929_v62   ;;  %990 = vperm.xlu0 %2100, %v1928_v63   ;;  %v1025_v62 = vmul.f32 2.0, %v1005_v48  ;;  %v2543_v63 = vmul.f32 2.0, %v1004_v49 }
 0x167   : > { %1052 = vperm.xlu1 %2101, %v1933_v0   ;;  %1049 = vperm.xlu0 %2100, %v1932_v1  }
 0x16b   : > { %1111 = vperm.xlu1 %2101, %v1937_v2   ;;  %1108 = vperm.xlu0 %2100, %v1936_v3   ;;  %v2545_v2 = vmul.f32 2.0, %v1064_v53  ;;  %v2547_v3 = vmul.f32 2.0, %v1063_v54 }
 0x16f   : > { %1170 = vperm.xlu1 %2101, %v1941_v4   ;;  %1167 = vperm.xlu0 %2100, %v1940_v5  }
 0x1ae   : > { %v2517_v9 = vpop.permute.xlu1 %750  ;;  %v710_v10 = vpop.permute.xlu0 %709 }
 0x1af   : > { %v723_v12 = vadd.f32 %v2515_v7, %v710_v10  ;;  %v2552_v10 = vmul.f32 2.0, %v1123_v58 }
 0x1b1   : > { %v727_v13 = vsub.f32 %v723_v12, %v725_v8 }
 0x1b2   : > { %v2520_v15 = vpop.permute.xlu1 %753  ;;  %v715_v16 = vpop.permute.xlu0 %714 }
 0x1b3   : > { %v2522_v19 = vmax.f32 %v727_v13, 0.0  ;;  %v724_v20 = vadd.f32 %v2515_v7, %v715_v16 }
 0x1b5   : > { %2102 = vrsqrt.f32 %v2522_v19  ;;  %v728_v21 = vsub.f32 %v724_v20, %v726_v14  ;;  %vm733_vm1 = vcmp.eq.f32.partialorder %v2522_v19, inf  ;;  %vm735_vm2 = vcmp.eq.f32.partialorder %v2522_v19, 0.0 }
 0x1b6   : > { %v784_v24 = vpop.permute.xlu1 %783  ;;  %v779_v25 = vpop.permute.xlu0 %778  ;;  %v736_v18 = vand.u32 2147483648, %v2522_v19 }
 0x1b7   : > { %v2526_v27 = vmax.f32 %v728_v21, 0.0  ;;  %v787_v28 = vadd.f32 %v2515_v7, %v784_v24  ;;  %v786_v29 = vadd.f32 %v2515_v7, %v779_v25 }
 0x1b9   : > { %2104 = vrsqrt.f32 %v2526_v27  ;;  %v791_v31 = vsub.f32 %v787_v28, %v789_v22  ;;  %v790_v32 = vsub.f32 %v786_v29, %v788_v23  ;;  %vm740_vm3 = vcmp.eq.f32.partialorder %v2526_v27, inf }
 0x1ba   : > { %v843_v34 = vpop.permute.xlu1 %842  ;;  %v838_v36 = vpop.permute.xlu0 %837  ;;  %vm742_vm4 = vcmp.eq.f32.partialorder %v2526_v27, 0.0  ;;  %v743_v21 = vand.u32 2147483648, %v2526_v27 }
 0x1bb   : > { %v2531_v39 = vmax.f32 %v791_v31, 0.0  ;;  %v2533_v40 = vmax.f32 %v790_v32, 0.0  ;;  %v846_v41 = vadd.f32 %v2515_v7, %v843_v34  ;;  %v845_v42 = vadd.f32 %v2515_v7, %v838_v36 }
 0x1bd   : > { %2106 = vrsqrt.f32 %v2531_v39  ;;  %v850_v44 = vsub.f32 %v846_v41, %v848_v33  ;;  %v849_v50 = vsub.f32 %v845_v42, %v847_v35  ;;  %vm803_vm5 = vcmp.eq.f32.partialorder %v2531_v39, inf }
 0x1be   : > { %2108 = vrsqrt.f32 %v2533_v40  ;;  %v902_v51 = vpop.permute.xlu1 %901  ;;  %v897_v52 = vpop.permute.xlu0 %896  ;;  %vm805_vm6 = vcmp.eq.f32.partialorder %v2531_v39, 0.0  ;;  %v806_v31 = vand.u32 2147483648, %v2531_v39  ;;  %vm796_vm7 = vcmp.eq.f32.partialorder %v2533_v40, inf }
 0x1bf   : > { %v2539_v55 = vmax.f32 %v850_v44, 0.0  ;;  %v905_v56 = vadd.f32 %v2515_v7, %v902_v51  ;;  %v904_v57 = vadd.f32 %v2515_v7, %v897_v52  ;;  %v2550_v5 = vmax.f32 %v849_v50, 0.0 }
 0x1c0   : > { %vm798_vm8 = vcmp.eq.f32.partialorder %v2533_v40, 0.0 }
 0x1c1   : > { %v909_v0 = vsub.f32 %v905_v56, %v907_v45  ;;  %v908_v1 = vsub.f32 %v904_v57, %v906_v46  ;;  %2110 = vrsqrt.f32 %v2539_v55  ;;  %v799_v46 = vand.u32 2147483648, %v2533_v40  ;;  %v2606_v56 = vld [vmem:[%s2446_s22] ss:$0 sm:$0xff] }
 0x1c2   : > { %v2103_v4 = vpop.eup %2102  ;;  %v961_v6 = vpop.permute.xlu1 %960  ;;  %2112 = vrsqrt.f32 %v2550_v5  ;;  %vm862_vm9 = vcmp.eq.f32.partialorder %v2539_v55, inf  ;;  %vm864_vm10 = vcmp.eq.f32.partialorder %v2539_v55, 0.0  ;;  %v865_v54 = vand.u32 2147483648, %v2539_v55 }
 0x1c3   : > { %v956_v8 = vpop.permute.xlu0 %955  ;;  %v2556_v12 = vmax.f32 %v909_v0, 0.0  ;;  %v964_v13 = vadd.f32 %v2515_v7, %v961_v6  ;;  %v2561_v16 = vmax.f32 %v908_v1, 0.0  ;;  %v732_v17 = vmul.f32 %v2103_v4, %v2522_v19 }
 0x1c4   : > { %v963_v14 = vadd.f32 %v2515_v7, %v956_v8  ;;  %vm760_vm11 = vcmp.eq.s32.totalorder %v2520_v15, %v2606_v56  ;;  %vm855_vm12 = vcmp.eq.f32.partialorder %v2550_v5, inf  ;;  %v858_v1 = vand.u32 2147483648, %v2550_v5 }
 0x1c5   : > { %v968_v20 = vsub.f32 %v964_v13, %v966_v60  ;;  %v734_v26 = vsel %vm733_vm1, %v2522_v19, %v732_v17  ;;  %2114 = vrsqrt.f32 %v2556_v12  ;;  %vm857_vm13 = vcmp.eq.f32.partialorder %v2550_v5, 0.0 }
 0x1c6   : > { %v2105_v22 = vpop.eup %2104  ;;  %v967_v23 = vsub.f32 %v963_v14, %v965_v61  ;;  %v1020_v24 = vpop.permute.xlu1 %1019  ;;  %2116 = vrsqrt.f32 %v2561_v16  ;;  %v737_v34 = vsel %vm735_vm2, %v736_v18, %v734_v26  ;;  %vm921_vm14 = vcmp.eq.f32.partialorder %v2556_v12, inf }
 0x1c7   : > { %v1015_v25 = vpop.permute.xlu0 %1014  ;;  %v2573_v28 = vmax.f32 %v968_v20, 0.0  ;;  %v1023_v29 = vadd.f32 %v2515_v7, %v1020_v24  ;;  %v739_v32 = vmul.f32 %v2105_v22, %v2526_v27  ;;  %v745_v49 = vsub.f32 1.0, %v737_v34 }
 0x1c8   : > { %v1022_v30 = vadd.f32 %v2515_v7, %v1015_v25  ;;  %v2585_v36 = vmax.f32 %v967_v23, 0.0  ;;  %vm923_vm15 = vcmp.eq.f32.partialorder %v2556_v12, 0.0  ;;  %vm914_vm0 = vcmp.eq.f32.partialorder %v2561_v16, inf }
 0x1c9   : > { %2118 = vrsqrt.f32 %v2573_v28  ;;  %v1027_v33 = vsub.f32 %v1023_v29, %v1025_v62  ;;  %v741_v42 = vsel %vm740_vm3, %v2526_v27, %v739_v32  ;;  %v747_v6 = vmax.f32 %v745_v49, 0.0 }
 0x1ca   : > { %v2107_v35 = vpop.eup %2106  ;;  %v1026_v37 = vsub.f32 %v1022_v30, %v2543_v63  ;;  %v1079_v38 = vpop.permute.xlu1 %1078  ;;  %v744_v48 = vsel %vm742_vm4, %v743_v21, %v741_v42  ;;  %2120 = vrsqrt.f32 %v2585_v36  ;;  %vm759_vm1 = vcmp.eq.s32.totalorder %v2517_v9, %v2606_v56 }
 0x1cb   : > { %v1074_v41 = vpop.permute.xlu0 %1073  ;;  %v2109_v43 = vpop.eup %2108  ;;  %v1082_v44 = vadd.f32 %v2515_v7, %v1079_v38  ;;  %v802_v47 = vmul.f32 %v2107_v35, %v2531_v39  ;;  %v2601_v51 = vmax.f32 %v1027_v33, 0.0  ;;  %v746_v53 = vsub.f32 1.0, %v744_v48 }
 0x1cc   : > { %v1081_v45 = vadd.f32 %v2515_v7, %v1074_v41  ;;  %v795_v50 = vmul.f32 %v2109_v43, %v2533_v40  ;;  %v2609_v57 = vmax.f32 %v1026_v37, 0.0  ;;  %vm916_vm2 = vcmp.eq.f32.partialorder %v2561_v16, 0.0 }
 0x1cd   : > { %v1086_v52 = vsub.f32 %v1082_v44, %v2545_v2  ;;  %v804_v60 = vsel %vm803_vm5, %v2531_v39, %v802_v47  ;;  %v924_v2 = vand.u32 2147483648, %v2556_v12  ;;  %v748_v8 = vmax.f32 %v746_v53, 0.0 }
 0x1ce   : > { %v1138_v58 = vpop.permute.xlu1 %1137  ;;  %v797_v61 = vsel %vm796_vm7, %v2533_v40, %v795_v50  ;;  %v2111_v62 = vpop.eup %2110  ;;  %v1085_v63 = vsub.f32 %v1081_v45, %v2547_v3  ;;  %v807_v4 = vsel %vm805_vm6, %v806_v31, %v804_v60  ;;  %2122 = vrsqrt.f32 %v2601_v51 }
 0x1cf   : > { %v1133_v59 = vpop.permute.xlu0 %1132  ;;  %v1141_v0 = vadd.f32 %v2515_v7, %v1138_v58  ;;  %v800_v13 = vsel %vm798_vm8, %v799_v46, %v797_v61  ;;  %v2631_v3 = vmax.f32 %v1086_v52, 0.0  ;;  %v809_v14 = vsub.f32 1.0, %v807_v4  ;;  %v2113_v23 = vpop.eup %2112 }
 0x1d0   : > { %2124 = vrsqrt.f32 %v2609_v57  ;;  %v808_v20 = vsub.f32 1.0, %v800_v13  ;;  %v861_v21 = vmul.f32 %v2111_v62, %v2539_v55  ;;  %v917_v22 = vand.u32 2147483648, %v2561_v16 }
 0x1d1   : > { %v2641_v24 = vmax.f32 %v1085_v63, 0.0  ;;  %v1145_v25 = vsub.f32 %v1141_v0, %v2552_v10  ;;  %v1140_v26 = vadd.f32 %v2515_v7, %v1133_v59  ;;  %v811_v29 = vmax.f32 %v809_v14, 0.0 }
 0x1d2   : > { %v817_v17 = vpop.permute.xlu1 %816  ;;  %v2115_v30 = vpop.eup %2114  ;;  %v761_v31 = vmul.f32 %v747_v6, %v747_v6  ;;  %v762_v32 = vmul.f32 %v748_v8, %v748_v8  ;;  %v810_v33 = vmax.f32 %v808_v20, 0.0  ;;  %v863_v34 = vsel %vm862_vm9, %v2539_v55, %v861_v21 }
 0x1d3   : > { %v814_v18 = vpop.permute.xlu0 %813  ;;  %v2117_v35 = vpop.eup %2116  ;;  %2126 = vrsqrt.f32 %v2631_v3  ;;  %vm819_vm3 = vcmp.eq.s32.totalorder %v817_v17, %v2606_v56  ;;  %v821_v37 = vmul.f32 %v811_v29, %v811_v29  ;;  %v866_v10 = vsel %vm864_vm10, %v865_v54, %v863_v34 }
 0x1d4   : > { %vm818_vm4 = vcmp.eq.s32.totalorder %v814_v18, %v2606_v56  ;;  %v820_v7 = vmul.f32 %v810_v33, %v810_v33  ;;  %v868_v42 = vsub.f32 1.0, %v866_v10  ;;  %v854_v43 = vmul.f32 %v2113_v23, %v2550_v5 }
 0x1d5   : > { %2128 = vrsqrt.f32 %v2641_v24  ;;  %v2655_v44 = vmax.f32 %v1145_v25, 0.0  ;;  %v1144_v45 = vsub.f32 %v1140_v26, %v2554_v11  ;;  %v920_v46 = vmul.f32 %v2115_v30, %v2556_v12 }
 0x1d6   : > { %v2119_v38 = vpop.eup %2118  ;;  %v876_v41 = vpop.permute.xlu1 %875  ;;  %v823_v47 = vsel %vm819_vm3, %v2531_v39, %v821_v37  ;;  %v764_v48 = vsel %vm760_vm11, %v2526_v27, %v762_v32  ;;  %v856_v50 = vsel %vm855_vm12, %v2550_v5, %v854_v43  ;;  %v913_v52 = vmul.f32 %v2117_v35, %v2561_v16 }
 0x1d7   : > { %v873_v49 = vpop.permute.xlu0 %872  ;;  %v822_v53 = vsel %vm818_vm4, %v2533_v40, %v820_v7  ;;  %v859_v11 = vsel %vm857_vm13, %v858_v1, %v856_v50  ;;  %v922_v39 = vsel %vm921_vm14, %v2556_v12, %v920_v46  ;;  %v979_v54 = vmul.f32 %v2119_v38, %v2573_v28  ;;  %v2121_v60 = vpop.eup %2120 }
 0x1d8   : > { %v870_v15 = vmax.f32 %v868_v42, 0.0  ;;  %v867_v27 = vsub.f32 1.0, %v859_v11  ;;  %v925_v58 = vsel %vm923_vm15, %v924_v2, %v922_v39  ;;  %v915_v59 = vsel %vm914_vm0, %v2561_v16, %v913_v52 }
 0x1d9   : > { %v763_v40 = vsel %vm759_vm1, %v2522_v19, %v761_v31  ;;  %v927_v61 = vsub.f32 1.0, %v925_v58  ;;  %v918_v62 = vsel %vm916_vm2, %v917_v22, %v915_v59  ;;  %vm980_vm5 = vcmp.eq.f32.partialorder %v2573_v28, inf }
 0x1da   : > { %2130 = vrsqrt.f32 %v2655_v44  ;;  %v2688_v63 = vmax.f32 %v1144_v45, 0.0  ;;  %v869_v0 = vmax.f32 %v867_v27, 0.0  ;;  %v935_v1 = vpop.permute.xlu1 %934  ;;  %v926_v2 = vsub.f32 1.0, %v918_v62 }
 0x1db   : > { %v765_v4 = vadd.f32 %v764_v48, %v763_v40  ;;  %v824_v6 = vadd.f32 %v823_v47, %v822_v53  ;;  %v981_v8 = vsel %vm980_vm5, %v2573_v28, %v979_v54  ;;  %v983_v9 = vand.u32 2147483648, %v2573_v28  ;;  %v2123_v19 = vpop.eup %2122  ;;  %v932_v14 = vpop.permute.xlu0 %931 }
 0x1dc   : > { %vm878_vm6 = vcmp.eq.s32.totalorder %v876_v41, %v2606_v56  ;;  %v880_v13 = vmul.f32 %v870_v15, %v870_v15  ;;  %vm982_vm7 = vcmp.eq.f32.partialorder %v2573_v28, 0.0  ;;  %v972_v17 = vmul.f32 %v2121_v60, %v2585_v36 }
 0x1dd   : > { %v2125_v18 = vpop.eup %2124  ;;  %v879_v20 = vmul.f32 %v869_v0, %v869_v0  ;;  %v929_v21 = vmax.f32 %v927_v61, 0.0  ;;  %v984_v22 = vsel %vm982_vm7, %v983_v9, %v981_v8  ;;  %vm973_vm8 = vcmp.eq.f32.partialorder %v2585_v36, inf }
 0x1de   : > { %vm877_vm9 = vcmp.eq.s32.totalorder %v873_v49, %v2606_v56  ;;  %v928_v23 = vmax.f32 %v926_v2, 0.0  ;;  %v986_v25 = vsub.f32 1.0, %v984_v22  ;;  %v974_v26 = vsel %vm973_vm8, %v2585_v36, %v972_v17  ;;  %v994_v33 = vpop.permute.xlu1 %993 }
 0x1df   : > { %2132 = vrsqrt.f32 %v2688_v63  ;;  %v2699_v29 = vadd.f32 %v824_v6, %v765_v4  ;;  %v976_v30 = vand.u32 2147483648, %v2585_v36  ;;  %v882_v32 = vsel %vm878_vm6, %v2539_v55, %v880_v13  ;;  %v991_v43 = vpop.permute.xlu0 %990 }
 0x1e0   : > { %v2127_v31 = vpop.eup %2126  ;;  %vm937_vm10 = vcmp.eq.s32.totalorder %v935_v1, %v2606_v56  ;;  %vm975_vm11 = vcmp.eq.f32.partialorder %v2585_v36, 0.0  ;;  %v1038_v34 = vmul.f32 %v2123_v19, %v2601_v51  ;;  %v881_v35 = vsel %vm877_vm9, %v2550_v5, %v879_v20 }
 0x1e1   : > { %v939_v37 = vmul.f32 %v929_v21, %v929_v21  ;;  %v977_v10 = vsel %vm975_vm11, %v976_v30, %v974_v26  ;;  %vm1039_vm12 = vcmp.eq.f32.partialorder %v2601_v51, inf  ;;  %v938_v7 = vmul.f32 %v928_v23, %v928_v23 }
 0x1e2   : > { %v2129_v38 = vpop.eup %2128  ;;  %v988_v42 = vmax.f32 %v986_v25, 0.0  ;;  %v1040_v41 = vsel %vm1039_vm12, %v2601_v51, %v1038_v34  ;;  %v1042_v55 = vand.u32 2147483648, %v2601_v51  ;;  %vm936_vm13 = vcmp.eq.s32.totalorder %v932_v14, %v2606_v56  ;;  %v1053_v39 = vpop.permute.xlu1 %1052 }
 0x1e3   : > { %v985_v45 = vsub.f32 1.0, %v977_v10  ;;  %vm1041_vm14 = vcmp.eq.f32.partialorder %v2601_v51, 0.0  ;;  %v1031_v46 = vmul.f32 %v2125_v18, %v2609_v57  ;;  %v2715_v5 = vadd.f32 %v882_v32, %v881_v35  ;;  %v1050_v59 = vpop.permute.xlu0 %1049 }
 0x1e4   : > { %vm996_vm15 = vcmp.eq.s32.totalorder %v994_v33, %v2606_v56  ;;  %v1043_v47 = vsel %vm1041_vm14, %v1042_v55, %v1040_v41  ;;  %vm1032_vm0 = vcmp.eq.f32.partialorder %v2609_v57, inf  ;;  %v941_v48 = vsel %vm937_vm10, %v2556_v12, %v939_v37 }
 0x1e5   : > { %v1045_v49 = vsub.f32 1.0, %v1043_v47  ;;  %v1033_v50 = vsel %vm1032_vm0, %v2609_v57, %v1031_v46  ;;  %v1035_v52 = vand.u32 2147483648, %v2609_v57  ;;  %v940_v53 = vsel %vm936_vm13, %v2561_v16, %v938_v7 }
 0x1e6   : > { %v998_v11 = vmul.f32 %v988_v42, %v988_v42  ;;  %vm1034_vm1 = vcmp.eq.f32.partialorder %v2609_v57, 0.0  ;;  %v1097_v54 = vmul.f32 %v2127_v31, %v2631_v3  ;;  %v987_v27 = vmax.f32 %v985_v45, 0.0  ;;  %v1112_v13 = vpop.permute.xlu1 %1111 }
 0x1e7   : > { %v2131_v15 = vpop.eup %2130  ;;  %v1036_v58 = vsel %vm1034_vm1, %v1035_v52, %v1033_v50  ;;  %vm1098_vm2 = vcmp.eq.f32.partialorder %v2631_v3, inf  ;;  %v1101_v12 = vand.u32 2147483648, %v2631_v3  ;;  %vm1100_vm3 = vcmp.eq.f32.partialorder %v2631_v3, 0.0  ;;  %v1109_v22 = vpop.permute.xlu0 %1108 }
 0x1e8   : > { %v1044_v60 = vsub.f32 1.0, %v1036_v58  ;;  %v1099_v40 = vsel %vm1098_vm2, %v2631_v3, %v1097_v54  ;;  %v1090_v16 = vmul.f32 %v2129_v38, %v2641_v24  ;;  %vm995_vm4 = vcmp.eq.s32.totalorder %v991_v43, %v2606_v56  ;;  %v1180_v54 = vld [vmem:[%s2411_s1] sm:$0xff] }
 0x1e9   : > { %v1047_v61 = vmax.f32 %v1045_v49, 0.0  ;;  %v1102_v62 = vsel %vm1100_vm3, %v1101_v12, %v1099_v40  ;;  %vm1091_vm5 = vcmp.eq.f32.partialorder %v2641_v24, inf  ;;  %v942_v0 = vadd.f32 %v941_v48, %v940_v53 }
 0x1ea   : > { %v1046_v1 = vmax.f32 %v1044_v60, 0.0  ;;  %v1104_v2 = vsub.f32 1.0, %v1102_v62  ;;  %v1092_v4 = vsel %vm1091_vm5, %v2641_v24, %v1090_v16  ;;  %v1000_v6 = vsel %vm996_vm15, %v2573_v28, %v998_v11  ;;  %v1171_v7 = vpop.permute.xlu1 %1170 }
 0x1eb   : > { %v997_v8 = vmul.f32 %v987_v27, %v987_v27  ;;  %vm1055_vm6 = vcmp.eq.s32.totalorder %v1053_v39, %v2606_v56  ;;  %v1094_v9 = vand.u32 2147483648, %v2641_v24  ;;  %vm1054_vm7 = vcmp.eq.s32.totalorder %v1050_v59, %v2606_v56  ;;  %v1168_v47 = vpop.permute.xlu0 %1167 }
 0x1ec   : > { %v2133_v19 = vpop.eup %2132  ;;  %v1106_v14 = vmax.f32 %v1104_v2, 0.0  ;;  %vm1093_vm8 = vcmp.eq.f32.partialorder %v2641_v24, 0.0  ;;  %v1156_v17 = vmul.f32 %v2131_v15, %v2655_v44  ;;  %v1057_v18 = vmul.f32 %v1047_v61, %v1047_v61 }
 0x1ed   : > { %v1095_v20 = vsel %vm1093_vm8, %v1094_v9, %v1092_v4  ;;  %vm1157_vm9 = vcmp.eq.f32.partialorder %v2655_v44, inf  ;;  %v1160_v28 = vand.u32 2147483648, %v2655_v44  ;;  %v1056_v21 = vmul.f32 %v1046_v1, %v1046_v1 }
 0x1ee   : > { %v1103_v23 = vsub.f32 1.0, %v1095_v20  ;;  %v1158_v25 = vsel %vm1157_vm9, %v2655_v44, %v1156_v17  ;;  %vm1159_vm10 = vcmp.eq.f32.partialorder %v2655_v44, 0.0  ;;  %v999_v26 = vsel %vm995_vm4, %v2585_v36, %v997_v8 }
 0x1ef   : > { %vm1114_vm11 = vcmp.eq.s32.totalorder %v1112_v13, %v2606_v56  ;;  %v1161_v30 = vsel %vm1159_vm10, %v1160_v28, %v1158_v25  ;;  %v1149_v31 = vmul.f32 %v2133_v19, %v2688_v63  ;;  %v1116_v32 = vmul.f32 %v1106_v14, %v1106_v14 }
 0x1f0   : > { %v1105_v33 = vmax.f32 %v1103_v23, 0.0  ;;  %v1163_v34 = vsub.f32 1.0, %v1161_v30  ;;  %vm1150_vm12 = vcmp.eq.f32.partialorder %v2688_v63, inf  ;;  %v1059_v35 = vsel %vm1055_vm6, %v2601_v51, %v1057_v18 }
 0x1f1   : > { %vm1113_vm13 = vcmp.eq.s32.totalorder %v1109_v22, %v2606_v56  ;;  %v1151_v37 = vsel %vm1150_vm12, %v2688_v63, %v1149_v31  ;;  %v1153_v36 = vand.u32 2147483648, %v2688_v63  ;;  %v1058_v10 = vsel %vm1054_vm7, %v2609_v57, %v1056_v21 }
 0x1f2   : > { %v1115_v38 = vmul.f32 %v1105_v33, %v1105_v33  ;;  %v1165_v42 = vmax.f32 %v1163_v34, 0.0  ;;  %vm1152_vm14 = vcmp.eq.f32.partialorder %v2688_v63, 0.0  ;;  %v884_v43 = vadd.f32 %v2715_v5, %v2699_v29 }
 0x1f3   : > { %v1001_v41 = vadd.f32 %v1000_v6, %v999_v26  ;;  %v1154_v51 = vsel %vm1152_vm14, %v1153_v36, %v1151_v37  ;;  %v1118_v55 = vsel %vm1114_vm11, %v2631_v3, %v1116_v32  ;;  %v1060_v49 = vadd.f32 %v1059_v35, %v1058_v10 }
 0x1f4   : > { %v1117_v45 = vsel %vm1113_vm13, %v2641_v24, %v1115_v38  ;;  %v1175_v46 = vmul.f32 %v1165_v42, %v1165_v42  ;;  %v1162_v57 = vsub.f32 1.0, %v1154_v51  ;;  %v943_v48 = vadd.f32 %v942_v0, %v884_v43 }
 0x1f5   : > { %vm1173_vm15 = vcmp.eq.s32.totalorder %v1171_v7, %v2606_v56  ;;  %v1119_v29 = vadd.f32 %v1118_v55, %v1117_v45  ;;  %vm1172_vm0 = vcmp.eq.s32.totalorder %v1168_v47, %v2606_v56 }
 0x1f6   : > { %v1164_v50 = vmax.f32 %v1162_v57, 0.0  ;;  %v1002_v52 = vadd.f32 %v1001_v41, %v943_v48  ;;  %v1177_v5 = vsel %vm1173_vm15, %v2655_v44, %v1175_v46 }
 0x1f8   : > { %v1174_v53 = vmul.f32 %v1164_v50, %v1164_v50  ;;  %v1061_v3 = vadd.f32 %v1060_v49, %v1002_v52 }
 0x1fa   : > { %v1176_v24 = vsel %vm1172_vm0, %v2688_v63, %v1174_v53  ;;  %v1120_v11 = vadd.f32 %v1119_v29, %v1061_v3 }
 0x1fb   : > { %v1178_v39 = vadd.f32 %v1177_v5, %v1176_v24 }
 0x1fd   : > { %v1179_v15 = vadd.f32 %v1178_v39, %v1120_v11 }
 0x1ff   : > { %v1181_v27 = vadd.f32 %v1180_v54, %v1179_v15 }
 0x201   : > { %1182 = vst [vmem:[%s2411_s1] sm:$0xff] %v1181_v27 }
 0x202 PF: > { %p1942_p7 = scmp.ne.s32.totalorder %s2417_s21, 2 }
 0x203   : > { %s2809_s9 = sld [smem:[#allocation5 + %s2274_s24]] (!%p1942_p7) }
 0x204   : > { %1186 = sbr.rel (%p1942_p7) target bundleno = 738 (0x2e2), region = 60  ;;  %s1195_s2 = sld [smem:[#allocation4 + %s2274_s24]] (!%p1942_p7) }
 0x209   : > { %v1201_v56 = vld [vmem:[%s2441_s17] sm:$0xff]  ;;  %v2289_v63 = vmov 0   ;;  %v1202_v58 = vld [vmem:[%s2441_s17 + $0x8] sm:$0xff]  ;;  %v1948_v59 = vld [vmem:[%s2431_s20 + $0x18] sm:$0xff]  ;;  %v1191_v45 = vlaneseq  ;;  %s1943_s26 = sshll.u32 %s2809_s9, 7 }
 0x20a   : > { %v1199_v44 = vld [vmem:[%s2431_s20] sm:$0xff]  ;;  %2135 = vset.pattern.permute.xlu1 %v2289_v63  ;;  %2134 = vset.pattern.permute.xlu0 %v2289_v63  ;;  %v1200_v12 = vld [vmem:[%s2431_s20 + $0x8] sm:$0xff]  ;;  %v1947_v60 = vld [vmem:[%s2431_s20 + $0x10] sm:$0xff]  ;;  %s2825_s12 = sshll.u32 %s1195_s2, 7 }
 0x20b   : > { %1246 = vperm.xlu1 %2135, %v1201_v56   ;;  %1205 = vperm.xlu0 %2134, %v1199_v44   ;;  %v1952_v40 = vld [vmem:[%s2431_s20 + $0x28] sm:$0xff]  ;;  %v1951_v16 = vld [vmem:[%s2431_s20 + $0x20] sm:$0xff]  ;;  %v1956_v61 = vld [vmem:[%s2431_s20 + $0x38] sm:$0xff]  ;;  %v1192_v63 = vand.u32 127, %v1191_v45  ;;  %s1331_s18 = sadd.s32 16, %s2825_s12  ;;  %s1398_s21 = sadd.s32 32, %s2825_s12 }
 0x20c   : > { %v1955_v62 = vld [vmem:[%s2431_s20 + $0x30] sm:$0xff]  ;;  %v1960_v0 = vld [vmem:[%s2431_s20 + $0x48] sm:$0xff]  ;;  %v1959_v1 = vld [vmem:[%s2431_s20 + $0x40] sm:$0xff]  ;;  %s1465_s28 = sadd.s32 48, %s2825_s12  ;;  %s1532_s30 = sadd.s32 64, %s2825_s12 }
 0x20d   : > { %v1964_v2 = vld [vmem:[%s2431_s20 + $0x58] sm:$0xff]  ;;  %v1963_v4 = vld [vmem:[%s2431_s20 + $0x50] sm:$0xff]  ;;  %v1968_v6 = vld [vmem:[%s2431_s20 + $0x68] sm:$0xff]  ;;  %s1599_s11 = sadd.s32 80, %s2825_s12  ;;  %s1666_s16 = sadd.s32 96, %s2825_s12 }
 0x20e   : > { %v1967_v8 = vld [vmem:[%s2431_s20 + $0x60] sm:$0xff]  ;;  %v1972_v9 = vld [vmem:[%s2431_s20 + $0x78] sm:$0xff]  ;;  %v1971_v19 = vld [vmem:[%s2431_s20 + $0x70] sm:$0xff]  ;;  %s1733_s15 = sadd.s32 112, %s2825_s12 }
 0x20f   : > { %1249 = vperm.xlu1 %2135, %v1202_v58   ;;  %1210 = vperm.xlu0 %2134, %v1200_v12   ;;  %v1950_v13 = vld [vmem:[%s2441_s17 + $0x18] sm:$0xff]  ;;  %v1949_v14 = vld [vmem:[%s2441_s17 + $0x10] sm:$0xff]  ;;  %v1954_v17 = vld [vmem:[%s2441_s17 + $0x28] sm:$0xff]  ;;  %v2838_v58 = vshrl.u32 %v1191_v45, 7 }
 0x210   : > { %v1953_v18 = vld [vmem:[%s2441_s17 + $0x20] sm:$0xff]  ;;  %v1958_v20 = vld [vmem:[%s2441_s17 + $0x38] sm:$0xff]  ;;  %v1957_v28 = vld [vmem:[%s2441_s17 + $0x30] sm:$0xff] }
 0x211   : > { %v1962_v21 = vld [vmem:[%s2441_s17 + $0x48] sm:$0xff]  ;;  %v1961_v22 = vld [vmem:[%s2441_s17 + $0x40] sm:$0xff]  ;;  %v1966_v23 = vld [vmem:[%s2441_s17 + $0x58] sm:$0xff] }
 0x212   : > { %v1965_v25 = vld [vmem:[%s2441_s17 + $0x50] sm:$0xff]  ;;  %v1970_v26 = vld [vmem:[%s2441_s17 + $0x68] sm:$0xff]  ;;  %v1969_v30 = vld [vmem:[%s2441_s17 + $0x60] sm:$0xff] }
 0x213   : > { %1290 = vperm.xlu1 %2135, %v1948_v59   ;;  %1285 = vperm.xlu0 %2134, %v1947_v60   ;;  %v1974_v31 = vld [vmem:[%s2441_s17 + $0x78] sm:$0xff]  ;;  %v1973_v32 = vld [vmem:[%s2441_s17 + $0x70] sm:$0xff]  ;;  %v2813_v34 = vld [vmem:[%s2436_s14] ss:$0 sm:$0xff] }
 0x214   : > { %v1197_v33 = vld [vmem:[#allocation2 + $0x30] sm:$0xff]  ;;  %v1198_v10 = vld [vmem:[#allocation2] sm:$0xff]  ;;  %v1276_v38 = vld [vmem:[#allocation2 + $0x18] sm:$0xff] }
 0x215   : > { %v1221_v35 = vmul.f32 2.0, %v1197_v33  ;;  %v1275_v42 = vld [vmem:[#allocation2 + $0x58] sm:$0xff]  ;;  %v1343_v43 = vld [vmem:[#allocation2 + $0x68] sm:$0xff]  ;;  %v1342_v41 = vld [vmem:[#allocation2 + $0x50] sm:$0xff]  ;;  %v1222_v47 = vmul.f32 2.0, %v1198_v10  ;;  %v1296_v52 = vmul.f32 2.0, %v1276_v38 }
 0x216   : > { %v1410_v51 = vld [vmem:[#allocation2 + $0x48] sm:$0xff]  ;;  %v1477_v57 = vld [vmem:[#allocation2 + $0x20] sm:$0xff]  ;;  %v1295_v29 = vmul.f32 2.0, %v1275_v42  ;;  %v2820_v5 = vmul.f32 2.0, %v1343_v43  ;;  %v2822_v53 = vmul.f32 2.0, %v1342_v41  ;;  %v1544_v54 = vld [vmem:[#allocation2 + $0x38] sm:$0xff]  ;;  %v1533_v43 = vstv %s1532_s30 }
 0x217   : > { %1357 = vperm.xlu1 %2135, %v1952_v40   ;;  %1352 = vperm.xlu0 %2134, %v1951_v16   ;;  %v1409_v55 = vld [vmem:[#allocation2 + $0x8] sm:$0xff]  ;;  %v1476_v48 = vld [vmem:[#allocation2 + $0x40] sm:$0xff]  ;;  %v2830_v11 = vmul.f32 2.0, %v1410_v51  ;;  %v1543_v15 = vld [vmem:[#allocation2 + $0x10] sm:$0xff]  ;;  %v2834_v56 = vmul.f32 2.0, %v1477_v57  ;;  %v1193_v40 = vstv %s1943_s26  ;;  %v1265_v16 = vstv %s2825_s12 }
 0x218   : > { %v2832_v39 = vmul.f32 2.0, %v1409_v55  ;;  %v1611_v27 = vld [vmem:[#allocation2 + $0x70] sm:$0xff]  ;;  %v2836_v44 = vmul.f32 2.0, %v1476_v48  ;;  %v1610_v59 = vld [vmem:[#allocation2 + $0x60] sm:$0xff]  ;;  %v1678_v60 = vld [vmem:[#allocation2 + $0x28] sm:$0xff]  ;;  %v1600_v55 = vstv %s1599_s11  ;;  %v1667_v48 = vstv %s1666_s16 }
 0x21b   : > { %1424 = vperm.xlu1 %2135, %v1956_v61   ;;  %1419 = vperm.xlu0 %2134, %v1955_v62  }
 0x21f   : > { %1491 = vperm.xlu1 %2135, %v1960_v0   ;;  %1486 = vperm.xlu0 %2134, %v1959_v1   ;;  %v2843_v0 = vmul.f32 2.0, %v1544_v54  ;;  %v2845_v1 = vmul.f32 2.0, %v1543_v15  ;;  %v2911_v15 = vadd.s32 %v1600_v55, %v2838_v58 }
 0x223   : > { %1558 = vperm.xlu1 %2135, %v1964_v2   ;;  %1553 = vperm.xlu0 %2134, %v1963_v4   ;;  %v2847_v2 = vmul.f32 2.0, %v1611_v27  ;;  %v1264_v4 = vadd.s32 8, %v2838_v58 }
 0x225   : > { %v2908_v54 = vadd.s32 %v1600_v55, %v1264_v4 }
 0x227   : > { %1625 = vperm.xlu1 %2135, %v1968_v6   ;;  %1620 = vperm.xlu0 %2134, %v1967_v8  }
 0x22b   : > { %1692 = vperm.xlu1 %2135, %v1972_v9   ;;  %1687 = vperm.xlu0 %2134, %v1971_v19   ;;  %v1677_v19 = vld [vmem:[#allocation2 + $0x78] sm:$0xff] }
 0x22f   : > { %1323 = vperm.xlu1 %2135, %v1950_v13   ;;  %1320 = vperm.xlu0 %2134, %v1949_v14   ;;  %v1332_v13 = vstv %s1331_s18  ;;  %v2856_v14 = vmul.f32 2.0, %v1610_v59  ;;  %v2917_v59 = vadd.s32 %v1667_v48, %v1264_v4 }
 0x230   : > { %v2882_v38 = vadd.s32 %v1332_v13, %v2838_v58 }
 0x233   : > { %1390 = vperm.xlu1 %2135, %v1954_v17   ;;  %1387 = vperm.xlu0 %2134, %v1953_v18   ;;  %v2858_v17 = vmul.f32 2.0, %v1678_v60  ;;  %v2860_v18 = vadd.s32 %v1193_v40, %v1192_v63 }
 0x237   : > { %1457 = vperm.xlu1 %2135, %v1958_v20   ;;  %1454 = vperm.xlu0 %2134, %v1957_v28   ;;  %v2863_v20 = vadd.s32 %v1265_v16, %v2838_v58 }
 0x239   : > { %vm1268_vm10 = vcmp.lt.s32.totalorder %v2863_v20, %v2860_v18 }
 0x23b   : > { %1524 = vperm.xlu1 %2135, %v1962_v21   ;;  %1521 = vperm.xlu0 %2134, %v1961_v22   ;;  %v1399_v22 = vstv %s1398_s21 }
 0x23c   : > { %v2887_v42 = vadd.s32 %v1399_v22, %v2838_v58 }
 0x23f   : > { %1591 = vperm.xlu1 %2135, %v1966_v23   ;;  %1588 = vperm.xlu0 %2134, %v1965_v25  }
 0x243   : > { %1658 = vperm.xlu1 %2135, %v1970_v26   ;;  %1655 = vperm.xlu0 %2134, %v1969_v30   ;;  %v2867_v26 = vmul.f32 2.0, %v1677_v19  ;;  %v2869_v30 = vadd.s32 %v1332_v13, %v1264_v4 }
 0x247   : > { %1725 = vperm.xlu1 %2135, %v1974_v31   ;;  %1722 = vperm.xlu0 %2134, %v1973_v32   ;;  %v2871_v31 = vadd.s32 %v1265_v16, %v1264_v4  ;;  %v1466_v32 = vstv %s1465_s28 }
 0x248   : > { %v2897_v57 = vadd.s32 %v1466_v32, %v2838_v58 }
 0x249   : > { %vm1269_vm15 = vcmp.lt.s32.totalorder %v2871_v31, %v2860_v18 }
 0x286   : > { %v2815_v37 = vpop.permute.xlu1 %1246  ;;  %v1206_v36 = vpop.permute.xlu0 %1205 }
 0x287   : > { %v1219_v7 = vadd.f32 %v2813_v34, %v1206_v36 }
 0x289   : > { %v1223_v46 = vsub.f32 %v1219_v7, %v1221_v35  ;;  %v2884_v7 = vadd.s32 %v1399_v22, %v1264_v4 }
 0x28a   : > { %v2818_v49 = vpop.permute.xlu1 %1249  ;;  %v1211_v50 = vpop.permute.xlu0 %1210 }
 0x28b   : > { %v2827_v3 = vmax.f32 %v1223_v46, 0.0  ;;  %v1220_v24 = vadd.f32 %v2813_v34, %v1211_v50 }
 0x28d   : > { %2136 = vrsqrt.f32 %v2827_v3  ;;  %v1224_v12 = vsub.f32 %v1220_v24, %v1222_v47  ;;  %v2894_v47 = vadd.s32 %v1466_v32, %v1264_v4  ;;  %vm1229_vm1 = vcmp.eq.f32.partialorder %v2827_v3, inf }
 0x28e   : > { %v1291_v61 = vpop.permute.xlu1 %1290  ;;  %v1286_v62 = vpop.permute.xlu0 %1285  ;;  %vm1231_vm2 = vcmp.eq.f32.partialorder %v2827_v3, 0.0 }
 0x28f   : > { %v2851_v6 = vmax.f32 %v1224_v12, 0.0  ;;  %v1294_v8 = vadd.f32 %v2813_v34, %v1291_v61  ;;  %v1293_v9 = vadd.f32 %v2813_v34, %v1286_v62  ;;  %v2921_v61 = vadd.s32 %v1667_v48, %v2838_v58 }
 0x291   : > { %2138 = vrsqrt.f32 %v2851_v6  ;;  %v1298_v28 = vsub.f32 %v1294_v8, %v1296_v52  ;;  %v1297_v21 = vsub.f32 %v1293_v9, %v1295_v29  ;;  %v2901_v29 = vadd.s32 %v1533_v43, %v1264_v4 }
 0x292   : > { %v1358_v23 = vpop.permute.xlu1 %1357  ;;  %v1353_v25 = vpop.permute.xlu0 %1352  ;;  %vm1236_vm3 = vcmp.eq.f32.partialorder %v2851_v6, inf  ;;  %vm1238_vm4 = vcmp.eq.f32.partialorder %v2851_v6, 0.0  ;;  %v1239_v32 = vand.u32 2147483648, %v2851_v6 }
 0x293   : > { %v2874_v33 = vmax.f32 %v1298_v28, 0.0  ;;  %v2876_v35 = vmax.f32 %v1297_v21, 0.0  ;;  %v1361_v36 = vadd.f32 %v2813_v34, %v1358_v23  ;;  %v1360_v10 = vadd.f32 %v2813_v34, %v1353_v25 }
 0x295   : > { %2140 = vrsqrt.f32 %v2874_v33  ;;  %v1365_v41 = vsub.f32 %v1361_v36, %v2820_v5  ;;  %v1364_v51 = vsub.f32 %v1360_v10, %v2822_v53  ;;  %v1734_v5 = vstv %s1733_s15  ;;  %v2949_v36 = vld [vmem:[%s2446_s22] ss:$0 sm:$0xff] }
 0x296   : > { %2142 = vrsqrt.f32 %v2876_v35  ;;  %v1425_v45 = vpop.permute.xlu1 %1424  ;;  %v1420_v46 = vpop.permute.xlu0 %1419  ;;  %v2906_v53 = vadd.s32 %v1533_v43, %v2838_v58  ;;  %v2923_v62 = vadd.s32 %v1734_v5, %v1264_v4  ;;  %v2926_v8 = vadd.s32 %v1734_v5, %v2838_v58 }
 0x297   : > { %v1428_v50 = vadd.f32 %v2813_v34, %v1425_v45  ;;  %v1427_v52 = vadd.f32 %v2813_v34, %v1420_v46  ;;  %v2903_v24 = vmax.f32 %v1365_v41, 0.0  ;;  %v2913_v27 = vmax.f32 %v1364_v51, 0.0 }
 0x298   : > { %vm1310_vm5 = vcmp.eq.f32.partialorder %v2874_v33, inf  ;;  %vm1312_vm6 = vcmp.eq.f32.partialorder %v2874_v33, 0.0  ;;  %vm1303_vm7 = vcmp.eq.f32.partialorder %v2876_v35, inf  ;;  %vm1305_vm8 = vcmp.eq.f32.partialorder %v2876_v35, 0.0 }
 0x299   : > { %v1432_v63 = vsub.f32 %v1428_v50, %v2830_v11  ;;  %v1431_v12 = vsub.f32 %v1427_v52, %v2832_v39  ;;  %v1232_v39 = vand.u32 2147483648, %v2827_v3  ;;  %2144 = vrsqrt.f32 %v2903_v24 }
 0x29a   : > { %v2137_v60 = vpop.eup %2136  ;;  %v1492_v40 = vpop.permute.xlu1 %1491  ;;  %2146 = vrsqrt.f32 %v2913_v27  ;;  %vm1255_vm9 = vcmp.eq.s32.totalorder %v2815_v37, %v2949_v36  ;;  %v1306_v5 = vand.u32 2147483648, %v2876_v35  ;;  %vm1377_vm11 = vcmp.eq.f32.partialorder %v2903_v24, inf }
 0x29b   : > { %v1487_v16 = vpop.permute.xlu0 %1486  ;;  %v1495_v9 = vadd.f32 %v2813_v34, %v1492_v40  ;;  %v2933_v19 = vmax.f32 %v1432_v63, 0.0  ;;  %v1228_v13 = vmul.f32 %v2137_v60, %v2827_v3  ;;  %v2938_v58 = vmax.f32 %v1431_v12, 0.0 }
 0x29c   : > { %v1494_v11 = vadd.f32 %v2813_v34, %v1487_v16  ;;  %vm1379_vm12 = vcmp.eq.f32.partialorder %v2903_v24, 0.0  ;;  %vm1370_vm13 = vcmp.eq.f32.partialorder %v2913_v27, inf  ;;  %vm1256_vm14 = vcmp.eq.s32.totalorder %v2818_v49, %v2949_v36 }
 0x29d   : > { %v1499_v4 = vsub.f32 %v1495_v9, %v2834_v56  ;;  %v1230_v25 = vsel %vm1229_vm1, %v2827_v3, %v1228_v13  ;;  %2148 = vrsqrt.f32 %v2933_v19  ;;  %vm1372_vm0 = vcmp.eq.f32.partialorder %v2913_v27, 0.0 }
 0x29e   : > { %v2139_v28 = vpop.eup %2138  ;;  %v1498_v21 = vsub.f32 %v1494_v11, %v2836_v44  ;;  %v1559_v22 = vpop.permute.xlu1 %1558  ;;  %v1313_v44 = vand.u32 2147483648, %v2874_v33  ;;  %v1233_v41 = vsel %vm1231_vm2, %v1232_v39, %v1230_v25  ;;  %2150 = vrsqrt.f32 %v2938_v58 }
 0x29f   : > { %v1554_v23 = vpop.permute.xlu0 %1553  ;;  %v2951_v10 = vmax.f32 %v1499_v4, 0.0  ;;  %v1562_v56 = vadd.f32 %v2813_v34, %v1559_v22  ;;  %v1235_v51 = vmul.f32 %v2139_v28, %v2851_v6  ;;  %v1241_v55 = vsub.f32 1.0, %v1233_v41 }
 0x2a0   : > { %v1561_v43 = vadd.f32 %v2813_v34, %v1554_v23  ;;  %v2967_v46 = vmax.f32 %v1498_v21, 0.0  ;;  %vm1444_vm1 = vcmp.eq.f32.partialorder %v2933_v19, inf  ;;  %vm1446_vm2 = vcmp.eq.f32.partialorder %v2933_v19, 0.0 }
 0x2a1   : > { %2152 = vrsqrt.f32 %v2951_v10  ;;  %v1237_v52 = vsel %vm1236_vm3, %v2851_v6, %v1235_v51  ;;  %v1566_v12 = vsub.f32 %v1562_v56, %v2843_v0  ;;  %v1243_v39 = vmax.f32 %v1241_v55, 0.0 }
 0x2a2   : > { %v2141_v45 = vpop.eup %2140  ;;  %v1626_v48 = vpop.permute.xlu1 %1625  ;;  %v1565_v60 = vsub.f32 %v1561_v43, %v2845_v1  ;;  %v1240_v11 = vsel %vm1238_vm4, %v1239_v32, %v1237_v52  ;;  %v1380_v1 = vand.u32 2147483648, %v2903_v24  ;;  %2154 = vrsqrt.f32 %v2967_v46 }
 0x2a3   : > { %v1621_v50 = vpop.permute.xlu0 %1620  ;;  %v2143_v63 = vpop.eup %2142  ;;  %v1629_v40 = vadd.f32 %v2813_v34, %v1626_v48  ;;  %v1309_v9 = vmul.f32 %v2141_v45, %v2874_v33  ;;  %v1242_v0 = vsub.f32 1.0, %v1240_v11  ;;  %v1257_v56 = vmul.f32 %v1243_v39, %v1243_v39 }
 0x2a4   : > { %v1628_v16 = vadd.f32 %v2813_v34, %v1621_v50  ;;  %v1302_v13 = vmul.f32 %v2143_v63, %v2876_v35  ;;  %v3002_v43 = vmax.f32 %v1565_v60, 0.0  ;;  %v1447_v60 = vand.u32 2147483648, %v2933_v19 }
 0x2a5   : > { %v1633_v4 = vsub.f32 %v1629_v40, %v2847_v2  ;;  %v1311_v23 = vsel %vm1310_vm5, %v2874_v33, %v1309_v9  ;;  %v2998_v2 = vmax.f32 %v1566_v12, 0.0  ;;  %v1244_v51 = vmax.f32 %v1242_v0, 0.0 }
 0x2a6   : > { %v1632_v28 = vsub.f32 %v1628_v16, %v2856_v14  ;;  %v1693_v21 = vpop.permute.xlu1 %1692  ;;  %v1304_v25 = vsel %vm1303_vm7, %v2876_v35, %v1302_v13  ;;  %v1314_v41 = vsel %vm1312_vm6, %v1313_v44, %v1311_v23  ;;  %v2145_v45 = vpop.eup %2144  ;;  %v1259_v16 = vsel %vm1255_vm9, %v2827_v3, %v1257_v56 }
 0x2a7   : > { %v1688_v22 = vpop.permute.xlu0 %1687  ;;  %v1696_v14 = vadd.f32 %v2813_v34, %v1693_v21  ;;  %v1307_v55 = vsel %vm1305_vm8, %v1306_v5, %v1304_v25  ;;  %v3010_v48 = vmax.f32 %v1633_v4, 0.0  ;;  %v1316_v50 = vsub.f32 1.0, %v1314_v41  ;;  %v2147_v52 = vpop.eup %2146 }
 0x2a8   : > { %v1695_v32 = vadd.f32 %v2813_v34, %v1688_v22  ;;  %v1373_v34 = vand.u32 2147483648, %v2913_v27  ;;  %v3014_v63 = vmax.f32 %v1632_v28, 0.0  ;;  %v1315_v44 = vsub.f32 1.0, %v1307_v55 }
 0x2a9   : > { %2156 = vrsqrt.f32 %v2998_v2  ;;  %v1700_v5 = vsub.f32 %v1696_v14, %v2858_v17  ;;  %vm1437_vm3 = vcmp.eq.f32.partialorder %v2938_v58, inf  ;;  %v1318_v9 = vmax.f32 %v1316_v50, 0.0 }
 0x2aa   : > { %v1324_v12 = vpop.permute.xlu1 %1323  ;;  %v1699_v40 = vsub.f32 %v1695_v32, %v2867_v26  ;;  %2158 = vrsqrt.f32 %v3002_v43  ;;  %v1258_v39 = vmul.f32 %v1244_v51, %v1244_v51  ;;  %v1376_v13 = vmul.f32 %v2145_v45, %v2903_v24  ;;  %v2149_v17 = vpop.eup %2148 }
 0x2ab   : > { %v1321_v11 = vpop.permute.xlu0 %1320  ;;  %vm1439_vm4 = vcmp.eq.f32.partialorder %v2938_v58, 0.0  ;;  %2160 = vrsqrt.f32 %v3010_v48  ;;  %vm1336_vm5 = vcmp.lt.s32.totalorder %v2869_v30, %v2860_v18  ;;  %v1369_v37 = vmul.f32 %v2147_v52, %v2913_v27  ;;  %v2151_v26 = vpop.eup %2150 }
 0x2ac   : > { %v1440_v3 = vand.u32 2147483648, %v2938_v58  ;;  %vm1511_vm6 = vcmp.eq.f32.partialorder %v2951_v10, inf  ;;  %2162 = vrsqrt.f32 %v3014_v63  ;;  %v3040_v4 = vsel %vm1268_vm10, %v1259_v16, 0.0 }
 0x2ad   : > { %v1317_v0 = vmax.f32 %v1315_v44, 0.0  ;;  %vm1335_vm7 = vcmp.lt.s32.totalorder %v2882_v38, %v2860_v18  ;;  %v1378_v28 = vsel %vm1377_vm11, %v2903_v24, %v1376_v13  ;;  %v3047_v22 = vmax.f32 %v1700_v5, 0.0 }
 0x2ae   : > { %v2153_v21 = vpop.eup %2152  ;;  %v3049_v23 = vmax.f32 %v1699_v40, 0.0  ;;  %v1391_v25 = vpop.permute.xlu1 %1390  ;;  %v1381_v14 = vsel %vm1379_vm12, %v1380_v1, %v1378_v28  ;;  %v1371_v20 = vsel %vm1370_vm13, %v2913_v27, %v1369_v37  ;;  %v1328_v32 = vmul.f32 %v1318_v9, %v1318_v9 }
 0x2af   : > { %v1260_v56 = vsel %vm1256_vm14, %v2851_v6, %v1258_v39  ;;  %v1383_v41 = vsub.f32 1.0, %v1381_v14  ;;  %v1374_v51 = vsel %vm1372_vm0, %v1373_v34, %v1371_v20  ;;  %vm1326_vm8 = vcmp.eq.s32.totalorder %v1324_v12, %v2949_v36  ;;  %v1388_v52 = vpop.permute.xlu0 %1387  ;;  %v2155_v34 = vpop.eup %2154 }
 0x2b0   : > { %vm1325_vm9 = vcmp.eq.s32.totalorder %v1321_v11, %v2949_v36  ;;  %v1382_v55 = vsub.f32 1.0, %v1374_v51  ;;  %v1443_v1 = vmul.f32 %v2149_v17, %v2933_v19  ;;  %v1327_v45 = vmul.f32 %v1317_v0, %v1317_v0 }
 0x2b1   : > { %v1385_v50 = vmax.f32 %v1383_v41, 0.0  ;;  %vm1403_vm10 = vcmp.lt.s32.totalorder %v2884_v7, %v2860_v18  ;;  %vm1402_vm11 = vcmp.lt.s32.totalorder %v2887_v42, %v2860_v18  ;;  %v1436_v49 = vmul.f32 %v2151_v26, %v2938_v58 }
 0x2b2   : > { %v1510_v6 = vmul.f32 %v2153_v21, %v2951_v10  ;;  %2164 = vrsqrt.f32 %v3047_v22  ;;  %v1271_v44 = vsel %vm1269_vm15, %v1260_v56, 0.0  ;;  %v1384_v5 = vmax.f32 %v1382_v55, 0.0  ;;  %v1458_v13 = vpop.permute.xlu1 %1457 }
 0x2b3   : > { %v1445_v40 = vsel %vm1444_vm1, %v2933_v19, %v1443_v1  ;;  %v1330_v16 = vsel %vm1326_vm8, %v2874_v33, %v1328_v32  ;;  %vm1393_vm12 = vcmp.eq.s32.totalorder %v1391_v25, %v2949_v36  ;;  %v1438_v39 = vsel %vm1437_vm3, %v2938_v58, %v1436_v49  ;;  %v1455_v11 = vpop.permute.xlu0 %1454 }
 0x2b4   : > { %v1448_v9 = vsel %vm1446_vm2, %v1447_v60, %v1445_v40  ;;  %v1395_v31 = vmul.f32 %v1385_v50, %v1385_v50  ;;  %v1441_v37 = vsel %vm1439_vm4, %v1440_v3, %v1438_v39  ;;  %v1512_v12 = vsel %vm1511_vm6, %v2951_v10, %v1510_v6 }
 0x2b5   : > { %v1450_v17 = vsub.f32 1.0, %v1448_v9  ;;  %v1329_v33 = vsel %vm1325_vm9, %v2876_v35, %v1327_v45  ;;  %v1394_v26 = vmul.f32 %v1384_v5, %v1384_v5  ;;  %vm1470_vm13 = vcmp.lt.s32.totalorder %v2894_v47, %v2860_v18 }
 0x2b6   : > { %v1449_v60 = vsub.f32 1.0, %v1441_v37  ;;  %v1514_v0 = vand.u32 2147483648, %v2951_v10  ;;  %2166 = vrsqrt.f32 %v3049_v23  ;;  %vm1392_vm14 = vcmp.eq.s32.totalorder %v1388_v52, %v2949_v36  ;;  %v2157_v28 = vpop.eup %2156  ;;  %v1525_v6 = vpop.permute.xlu1 %1524 }
 0x2b7   : > { %v1452_v3 = vmax.f32 %v1450_v17, 0.0  ;;  %vm1469_vm15 = vcmp.lt.s32.totalorder %v2897_v57, %v2860_v18  ;;  %vm1513_vm0 = vcmp.eq.f32.partialorder %v2951_v10, 0.0  ;;  %v1338_v35 = vsel %vm1336_vm5, %v1330_v16, 0.0  ;;  %v2159_v32 = vpop.eup %2158  ;;  %v1522_v9 = vpop.permute.xlu0 %1521 }
 0x2b8   : > { %v1451_v21 = vmax.f32 %v1449_v60, 0.0  ;;  %v1515_v14 = vsel %vm1513_vm0, %v1514_v0, %v1512_v12  ;;  %v1503_v20 = vmul.f32 %v2155_v34, %v2967_v46  ;;  %v1337_v56 = vsel %vm1335_vm7, %v1329_v33, 0.0  ;;  %v2161_v55 = vpop.eup %2160 }
 0x2b9   : > { %v1397_v41 = vsel %vm1393_vm12, %v2903_v24, %v1395_v31  ;;  %v1517_v51 = vsub.f32 1.0, %v1515_v14  ;;  %vm1504_vm1 = vcmp.eq.f32.partialorder %v2967_v46, inf  ;;  %v1396_v30 = vsel %vm1392_vm14, %v2913_v27, %v1394_v26  ;;  %v2163_v49 = vpop.eup %2162 }
 0x2ba   : > { %v1462_v1 = vmul.f32 %v1452_v3, %v1452_v3  ;;  %v1505_v45 = vsel %vm1504_vm1, %v2967_v46, %v1503_v20  ;;  %v1507_v50 = vand.u32 2147483648, %v2967_v46  ;;  %vm1460_vm2 = vcmp.eq.s32.totalorder %v1458_v13, %v2949_v36 }
 0x2bb   : > { %v1461_v38 = vmul.f32 %v1451_v21, %v1451_v21  ;;  %v1519_v25 = vmax.f32 %v1517_v51, 0.0  ;;  %vm1506_vm3 = vcmp.eq.f32.partialorder %v2967_v46, 0.0  ;;  %v1339_v24 = vadd.f32 %v1338_v35, %v1337_v56  ;;  %v1589_v57 = vpop.permute.xlu0 %1588 }
 0x2bc   : > { %vm1459_vm4 = vcmp.eq.s32.totalorder %v1455_v11, %v2949_v36  ;;  %vm1537_vm5 = vcmp.lt.s32.totalorder %v2901_v29, %v2860_v18  ;;  %v1508_v27 = vsel %vm1506_vm3, %v1507_v50, %v1505_v45  ;;  %v1577_v52 = vmul.f32 %v2157_v28, %v2998_v2 }
 0x2bd   : > { %v1272_v34 = vadd.f32 %v1271_v44, %v3040_v4  ;;  %v1405_v5 = vsel %vm1403_vm10, %v1397_v41, 0.0  ;;  %v1404_v40 = vsel %vm1402_vm11, %v1396_v30, 0.0  ;;  %vm1578_vm6 = vcmp.eq.f32.partialorder %v2998_v2, inf }
 0x2be   : > { %v1464_v16 = vsel %vm1460_vm2, %v2933_v19, %v1462_v1  ;;  %v1516_v39 = vsub.f32 1.0, %v1508_v27  ;;  %v1579_v31 = vsel %vm1578_vm6, %v2998_v2, %v1577_v52  ;;  %v1581_v13 = vand.u32 2147483648, %v2998_v2 }
 0x2bf   : > { %v1463_v4 = vsel %vm1459_vm4, %v2938_v58, %v1461_v38  ;;  %v1529_v44 = vmul.f32 %v1519_v25, %v1519_v25  ;;  %vm1580_vm7 = vcmp.eq.f32.partialorder %v2998_v2, 0.0  ;;  %v1570_v7 = vmul.f32 %v2159_v32, %v3002_v43  ;;  %v2165_v17 = vpop.eup %2164  ;;  %v1592_v58 = vpop.permute.xlu1 %1591 }
 0x2c0   : > { %v3139_v42 = vadd.f32 %v1339_v24, %v1272_v34  ;;  %vm1527_vm8 = vcmp.eq.s32.totalorder %v1525_v6, %v2949_v36  ;;  %v1582_v37 = vsel %vm1580_vm7, %v1581_v13, %v1579_v31  ;;  %vm1571_vm9 = vcmp.eq.f32.partialorder %v3002_v43, inf  ;;  %v1656_v52 = vpop.permute.xlu0 %1655 }
 0x2c1   : > { %v3143_v19 = vadd.f32 %v1405_v5, %v1404_v40  ;;  %v1472_v12 = vsel %vm1470_vm13, %v1464_v16, 0.0  ;;  %v1584_v33 = vsub.f32 1.0, %v1582_v37  ;;  %v1572_v26 = vsel %vm1571_vm9, %v3002_v43, %v1570_v7 }
 0x2c2   : > { %v1471_v60 = vsel %vm1469_vm15, %v1463_v4, 0.0  ;;  %v1518_v0 = vmax.f32 %v1516_v39, 0.0  ;;  %v1574_v3 = vand.u32 2147483648, %v3002_v43  ;;  %v1644_v28 = vmul.f32 %v2161_v55, %v3010_v48 }
 0x2c3   : > { %v1531_v35 = vsel %vm1527_vm8, %v2951_v10, %v1529_v44  ;;  %vm1536_vm10 = vcmp.lt.s32.totalorder %v2906_v53, %v2860_v18  ;;  %vm1573_vm11 = vcmp.eq.f32.partialorder %v3002_v43, 0.0  ;;  %vm1645_vm12 = vcmp.eq.f32.partialorder %v3010_v48, inf  ;;  %v2167_v11 = vpop.eup %2166  ;;  %v1659_v45 = vpop.permute.xlu1 %1658 }
 0x2c4   : > { %v1648_v47 = vand.u32 2147483648, %v3010_v48  ;;  %v1586_v21 = vmax.f32 %v1584_v33, 0.0  ;;  %vm1604_vm13 = vcmp.lt.s32.totalorder %v2908_v54, %v2860_v18  ;;  %v1575_v14 = vsel %vm1573_vm11, %v1574_v3, %v1572_v26  ;;  %v1723_v3 = vpop.permute.xlu0 %1722 }
 0x2c5   : > { %v1646_v20 = vsel %vm1645_vm12, %v3010_v48, %v1644_v28  ;;  %vm1647_vm14 = vcmp.eq.f32.partialorder %v3010_v48, 0.0  ;;  %v1473_v10 = vadd.f32 %v1472_v12, %v1471_v60  ;;  %vm1526_vm15 = vcmp.eq.s32.totalorder %v1522_v9, %v2949_v36 }
 0x2c6   : > { %v1583_v32 = vsub.f32 1.0, %v1575_v14  ;;  %vm1603_vm0 = vcmp.lt.s32.totalorder %v2911_v15, %v2860_v18  ;;  %v1649_v56 = vsel %vm1647_vm14, %v1648_v47, %v1646_v20  ;;  %v1528_v41 = vmul.f32 %v1518_v0, %v1518_v0 }
 0x2c7   : > { %vm1594_vm1 = vcmp.eq.s32.totalorder %v1592_v58, %v2949_v36  ;;  %v1651_v51 = vsub.f32 1.0, %v1649_v56  ;;  %v1637_v55 = vmul.f32 %v2163_v49, %v3014_v63  ;;  %v1539_v30 = vsel %vm1537_vm5, %v1531_v35, 0.0  ;;  %v1726_v4 = vpop.permute.xlu1 %1725 }
 0x2c8   : > { %v1585_v1 = vmax.f32 %v1583_v32, 0.0  ;;  %vm1671_vm2 = vcmp.lt.s32.totalorder %v2917_v59, %v2860_v18  ;;  %vm1638_vm3 = vcmp.eq.f32.partialorder %v3014_v63, inf  ;;  %v1641_v50 = vand.u32 2147483648, %v3014_v63 }
 0x2c9   : > { %vm1670_vm4 = vcmp.lt.s32.totalorder %v2921_v61, %v2860_v18  ;;  %v1596_v38 = vmul.f32 %v1586_v21, %v1586_v21  ;;  %v1653_v6 = vmax.f32 %v1651_v51, 0.0  ;;  %v1639_v49 = vsel %vm1638_vm3, %v3014_v63, %v1637_v55 }
 0x2ca   : > { %vm1640_vm6 = vcmp.eq.f32.partialorder %v3014_v63, 0.0  ;;  %vm1593_vm5 = vcmp.eq.s32.totalorder %v1589_v57, %v2949_v36  ;;  %v1595_v29 = vmul.f32 %v1585_v1, %v1585_v1  ;;  %v1711_v24 = vmul.f32 %v2165_v17, %v3047_v22 }
 0x2cb   : > { %v1642_v25 = vsel %vm1640_vm6, %v1641_v50, %v1639_v49  ;;  %v1530_v27 = vsel %vm1526_vm15, %v2967_v46, %v1528_v41  ;;  %vm1712_vm7 = vcmp.eq.f32.partialorder %v3047_v22, inf  ;;  %v1715_v5 = vand.u32 2147483648, %v3047_v22 }
 0x2cc   : > { %v1650_v34 = vsub.f32 1.0, %v1642_v25  ;;  %v1663_v40 = vmul.f32 %v1653_v6, %v1653_v6  ;;  %v1713_v16 = vsel %vm1712_vm7, %v3047_v22, %v1711_v24  ;;  %vm1714_vm8 = vcmp.eq.f32.partialorder %v3047_v22, 0.0 }
 0x2cd   : > { %v1704_v39 = vmul.f32 %v2167_v11, %v3049_v23  ;;  %v1598_v31 = vsel %vm1594_vm1, %v2998_v2, %v1596_v38  ;;  %vm1661_vm9 = vcmp.eq.s32.totalorder %v1659_v45, %v2949_v36  ;;  %v1716_v9 = vsel %vm1714_vm8, %v1715_v5, %v1713_v16 }
 0x2ce   : > { %v1652_v46 = vmax.f32 %v1650_v34, 0.0  ;;  %v1597_v13 = vsel %vm1593_vm5, %v3002_v43, %v1595_v29  ;;  %vm1660_vm11 = vcmp.eq.s32.totalorder %v1656_v52, %v2949_v36  ;;  %v1718_v44 = vsub.f32 1.0, %v1716_v9 }
 0x2cf   : > { %vm1705_vm12 = vcmp.eq.f32.partialorder %v3049_v23, inf  ;;  %v1538_v7 = vsel %vm1536_vm10, %v1530_v27, 0.0  ;;  %v1708_v37 = vand.u32 2147483648, %v3049_v23  ;;  %v1606_v12 = vsel %vm1604_vm13, %v1598_v31, 0.0 }
 0x2d0   : > { %v1662_v17 = vmul.f32 %v1652_v46, %v1652_v46  ;;  %v1706_v2 = vsel %vm1705_vm12, %v3049_v23, %v1704_v39  ;;  %v1665_v43 = vsel %vm1661_vm9, %v3010_v48, %v1663_v40  ;;  %v1720_v58 = vmax.f32 %v1718_v44, 0.0 }
 0x2d1   : > { %vm1707_vm14 = vcmp.eq.f32.partialorder %v3049_v23, 0.0  ;;  %v1605_v33 = vsel %vm1603_vm0, %v1597_v13, 0.0  ;;  %vm1728_vm10 = vcmp.eq.s32.totalorder %v1726_v4, %v2949_v36  ;;  %v1407_v60 = vadd.f32 %v3143_v19, %v3139_v42 }
 0x2d2   : > { %v1664_v53 = vsel %vm1660_vm11, %v3014_v63, %v1662_v17  ;;  %v1709_v26 = vsel %vm1707_vm14, %v1708_v37, %v1706_v2  ;;  %v1540_v0 = vadd.f32 %v1539_v30, %v1538_v7  ;;  %v1730_v54 = vmul.f32 %v1720_v58, %v1720_v58 }
 0x2d3   : > { %v1717_v28 = vsub.f32 1.0, %v1709_v26  ;;  %v1673_v48 = vsel %vm1671_vm2, %v1665_v43, 0.0  ;;  %v1672_v15 = vsel %vm1670_vm4, %v1664_v53, 0.0  ;;  %vm1738_vm13 = vcmp.lt.s32.totalorder %v2923_v62, %v2860_v18 }
 0x2d4   : > { %v1474_v63 = vadd.f32 %v1473_v10, %v1407_v60  ;;  %v1607_v35 = vadd.f32 %v1606_v12, %v1605_v33  ;;  %v1732_v42 = vsel %vm1728_vm10, %v3047_v22, %v1730_v54  ;;  %vm1727_vm15 = vcmp.eq.s32.totalorder %v1723_v3, %v2949_v36  ;;  %v1743_v10 = vld [vmem:[%s2411_s1] sm:$0xff] }
 0x2d5   : > { %v1719_v19 = vmax.f32 %v1717_v28, 0.0  ;;  %v1674_v11 = vadd.f32 %v1673_v48, %v1672_v15  ;;  %vm1737_vm0 = vcmp.lt.s32.totalorder %v2926_v8, %v2860_v18  ;;  %v1740_v61 = vsel %vm1738_vm13, %v1732_v42, 0.0 }
 0x2d6   : > { %v1541_v47 = vadd.f32 %v1540_v0, %v1474_v63 }
 0x2d7   : > { %v1729_v59 = vmul.f32 %v1719_v19, %v1719_v19 }
 0x2d8   : > { %v1608_v21 = vadd.f32 %v1607_v35, %v1541_v47 }
 0x2d9   : > { %v1731_v57 = vsel %vm1727_vm15, %v3049_v23, %v1729_v59 }
 0x2da   : > { %v1739_v62 = vsel %vm1737_vm0, %v1731_v57, 0.0  ;;  %v1675_v14 = vadd.f32 %v1674_v11, %v1608_v21 }
 0x2db   : > { %v1741_v20 = vadd.f32 %v1740_v61, %v1739_v62 }
 0x2dd   : > { %v1742_v32 = vadd.f32 %v1741_v20, %v1675_v14 }
 0x2df   : > { %v1744_v22 = vadd.f32 %v1743_v10, %v1742_v32 }
 0x2e1   : > { %1745 = vst [vmem:[%s2411_s1] sm:$0xff] %v1744_v22 }
 0x2e2 PF: > { %s1976_s0 = sshll.u32 %s2274_s24, 7  ;;  %s3301_s25 = sld [smem:[#allocation18_spill]] }
 0x2e3   : > { %s1760_s17 = sshll.u32 %s2411_s1, 4  ;;  %s3303_s19 = sand.u32 1, %s2266_s23   ;;  %s1761_s17 = int_to_ptr.vmem [resolvable:$true] %s1760_s17 }
 0x2e4   : > { %s1747_s27 = scalar_lea.sflag [#allocation8], %s3303_s19  ;;  %s2204_s22 = scalar_lea.vmem %s1761_s17, 128 }
 0x2e5   : > { %p2205_p8 = scmp.ne.s32.totalorder %s1761_s17, %s2204_s22  ;;  %s2290_s9 = smov [#allocation7]  }
 0x2e6   : > { %s2208_s2 = sshll.u32 %s2290_s9, 4  ;;  %s2209_s2 = int_to_ptr.vmem [resolvable:$false] %s2208_s2 }
 0x2e7   : > { %p2206_p10 = pnand %p2205_p8, %p2390_p5  ;;  %s2210_s26 = scalar_lea.vmem %s2209_s2, 256 }
 0x2e8   : > { %s3302_s29 = smov %s3301_s25  ;;  %s1758_s13 = scalar_lea.hbm %s3301_s25, %s1976_s0 }
 0x2e9   : > { %p2207_p11 = pneg %p2206_p10  ;;  %p2211_p12 = scmp.lt.s32.totalorder %s1761_s17, %s2209_s2 }
 0x2ea   : > { %p2212_p13 = scmp.lt.s32.totalorder %s2210_s26, %s2204_s22 }
 0x2ec   : > { %p2213_p0 = por %p2212_p13, %p2211_p12 }
 0x2ee   : > { %p2214_p1 = pnand %p2213_p0, %p2207_p11 }
 0x2f0   : > { %2217 = shalt.err (!%p2214_p1)
}
 0x2f1   : > { %s2218_s24 = scalar_lea.hbm %s1758_s13, 128  ;;  %s2222_s18 = scalar_lea.hbm %s3302_s29, 256 }
 0x2f2   : > { %p2219_p2 = scmp.ne.s32.totalorder %s1758_s13, %s2218_s24  ;;  %p2223_p6 = scmp.lt.s32.totalorder %s1758_s13, %s3302_s29 }
 0x2f3   : > { %p2224_p7 = scmp.lt.s32.totalorder %s2222_s18, %s2218_s24 }
 0x2f4   : > { %p2220_p3 = pnand %p2219_p2, %p2390_p5 }
 0x2f5   : > { %p2225_p8 = por %p2224_p7, %p2223_p6 }
 0x2f6   : > { %p2221_p4 = pneg %p2220_p3 }
 0x2f8   : > { %p2226_p10 = pnand %p2225_p8, %p2221_p4 }
 0x2fa   : > { %2229 = shalt.err (!%p2226_p10)
}
 0x2fb   : > { %2039 = dma.vmem_to_hbm [thread:$0]  (%p2390_p5), %s1761_s17, 128, %s1758_s13, %s1747_s27  }
 0x2fc PF: > { %s3304_s30 = sld [smem:[#allocation14_spill]] }
 0x2fd   : > { %s3305_s11 = sld [smem:[#allocation11_spill]] }
 0x302   : > { %p2045_p11 = scmp.ge.s32.totalorder %s3304_s30, 2 }
 0x303   : > { %s1772_s15 = sand.u32 1, %s3305_s11  }
 0x304   : > { %p2042_p12 = pnand %p2045_p11, %p2397_p9  ;;  %s1773_s0 = scalar_lea.sflag [#allocation8], %s1772_s15 }
 0x306   : > { %p2043_p13 = pneg %p2042_p12 }
 0x308   : > { %2257 = dma.done.wait (%p2043_p13), %s1773_s0, 128  }
 0x309   : > { %2259 = vsyncadd (%p2043_p13), %s1773_s0, 4294967168  ;;  %s36_s26 = sadd.s32 1, %s3304_s30   ;;  %s3307_s20 = sld [smem:[#allocation12_spill]] }
 0x30a   : > { %p33_p0 = scmp.ge.s32.totalorder %s36_s26, 4   ;;  %s3308_s2 = sld [smem:[#allocation17_spill]] }
 0x30b   : > { %s3309_s24 = sld [smem:[#allocation13_spill]]  ;;  %s3311_s22 = smov %s2266_s23 }
 0x30c   : > { %s3310_s25 = sld [smem:[#allocation15_spill]]  ;;  %35 = sbr.rel (!%p33_p0) target bundleno = 40 (0x28), region = 152 }
 0x30f   : > { %s3312_s23 = smov %s3307_s20 }
 0x311   :  { %1778 = vsyncpa [#allocation8], 1 }
 0x312   :  { %1780 = vsyncpa [#allocation8 + $0x1], 1 }

</bundles_post_ra>
